<compile_context>
chip_gen: v7x
topology: tpu7x:2x2x1
jax: 0.10.0
libtpu: 0.0.40
codegen_flags: <defaults>
</compile_context>

<pallas_src>
import functools

import jax
import jax.numpy as jnp
from jax.experimental import pallas as pl
from jax.experimental.pallas import tpu as pltpu

NEG_INF = float(jnp.finfo(jnp.float32).min)   # matches torch.finfo(float32).min
ACT_DTYPE = jnp.bfloat16                      # activation / weight storage dtype
PARAM_DTYPE = jnp.bfloat16


def _vmem_limit_bytes():
    """Per-chip VMEM limit (~70% of capacity); conservative 32 MiB fallback."""
    try:
        info = pltpu.get_tpu_info()
        cap = getattr(info, "vmem_capacity_bytes", None)
        if cap:
            return int(cap * 0.70)
    except Exception:
        pass
    return 32 * 1024 * 1024


VMEM_LIMIT = _vmem_limit_bytes()
TILE_BUDGET = int(VMEM_LIMIT * 0.75)          # headroom for compiler internals


# ----------------------------- tiling helpers -------------------------------

def _divisor_tile(dim, target, aligns):
    """Largest multiple of an alignment (first that admits one) dividing dim, <= target."""
    if dim <= target:
        return dim
    for a in aligns:
        t = (target // a) * a
        while t >= a:
            if dim % t == 0:
                return t
            t -= a
    return dim


def _prefer_split(dim, tile, align):
    """If a parallel axis would have a single block, try to split it in two (megacore)."""
    if tile == dim and dim >= 2 * align:
        t = _divisor_tile(dim, dim // 2, (align,))
        if 0 < t < dim and dim % t == 0:
            return t
    return tile


def _shrink(dim, cur, aligns):
    a_min = aligns[-1]
    if cur <= a_min:
        return cur
    nxt = _divisor_tile(dim, max(cur // 2, a_min), aligns)
    return nxt if 0 < nxt < cur else cur


def _mm_tiles(M, K, N, x_bytes, w_bytes, out_bytes, budget):
    tm = _prefer_split(M, _divisor_tile(M, 512, (16, 8)), 8)
    tn = _divisor_tile(N, 512, (256, 128))
    tk = _divisor_tile(K, 512, (256, 128))

    def vmem(tm_, tn_, tk_):
        return (2 * tm_ * tk_ * x_bytes + 2 * tk_ * tn_ * w_bytes
                + 2 * tm_ * tn_ * out_bytes + tm_ * tn_ * 4 + 2 * tn_ * 4)

    while vmem(tm, tn, tk) > budget:
        nk = _shrink(K, tk, (256, 128))
        if nk < tk:
            tk = nk; continue
        nn = _shrink(N, tn, (256, 128))
        if nn < tn:
            tn = nn; continue
        nm = _shrink(M, tm, (16, 8))
        if nm < tm:
            tm = nm; continue
        break
    return tm, tn, tk


def _mm_ln_tiles(M, K, N, x_bytes, w_bytes, res_bytes, out_bytes, budget):
    tm = _prefer_split(M, _divisor_tile(M, 512, (16, 8)), 8)
    tk = _divisor_tile(K, 512, (256, 128))

    def vmem(tm_, tk_):
        v = (2 * tm_ * tk_ * x_bytes + 2 * tk_ * N * w_bytes
             + 2 * tm_ * N * out_bytes + tm_ * N * 4 + 3 * 2 * N * 4)
        if res_bytes:
            v += 2 * tm_ * N * res_bytes
        return v

    while vmem(tm, tk) > budget:
        nk = _shrink(K, tk, (256, 128))
        if nk < tk:
            tk = nk; continue
        nm = _shrink(M, tm, (16, 8))
        if nm < tm:
            tm = nm; continue
        break
    return tm, tk


# ----------------------------- math helpers --------------------------------

def _erf_approx(x):
    # Abramowitz & Stegun 7.1.26 (max abs err ~1.5e-7).
    a1, a2, a3, a4, a5 = 0.254829592, -0.284496736, 1.421413741, -1.453152027, 1.061405429
    pc = 0.3275911
    ax = jnp.abs(x)
    t = 1.0 / (1.0 + pc * ax)
    poly = ((((a5 * t + a4) * t + a3) * t + a2) * t + a1) * t
    y = 1.0 - poly * jnp.exp(-ax * ax)
    return jnp.where(x >= 0, y, -y)


def _gelu_exact(x):
    # nn.GELU() (erf formulation), evaluated in f32.
    # TODO(synk): if the GELU epilogue becomes VALU-bound on v6e/v7x at large tiles,
    # switch to tanh-GELU (moves work to the otherwise-idle EUP slot).
    return 0.5 * x * (1.0 + _erf_approx(x * 0.7071067811865475))


# ----------------------------- Pallas kernels ------------------------------

def _mm_kernel(x_ref, w_ref, b_ref, o_ref, acc_ref, *, act):
    """Tiled matmul: grid (M/tm, N/tn, K/tk); epilogue = bias [+ GELU] on last k."""
    k = pl.program_id(2)

    @pl.when(k == 0)
    def _():
        acc_ref[...] = jnp.zeros_like(acc_ref)

    acc_ref[...] += jnp.dot(x_ref[...], w_ref[...], preferred_element_type=jnp.float32)

    @pl.when(k == pl.num_programs(2) - 1)
    def _():
        y = acc_ref[...] + b_ref[...].astype(jnp.float32)
        if act == "gelu":
            y = _gelu_exact(y)
        o_ref[...] = y.astype(o_ref.dtype)


def _mm_ln_kernel(*refs, eps, act, has_residual):
    """Tiled matmul with fused bias [+ GELU] [+ residual] + LayerNorm epilogue.

    Grid (M/tm, K/tk); N (= hidden) is a single tile so the LN reduction sees full rows.
    """
    if has_residual:
        x_ref, w_ref, b_ref, g_ref, bt_ref, r_ref, o_ref, acc_ref = refs
    else:
        x_ref, w_ref, b_ref, g_ref, bt_ref, o_ref, acc_ref = refs
        r_ref = None
    k = pl.program_id(1)

    @pl.when(k == 0)
    def _():
        acc_ref[...] = jnp.zeros_like(acc_ref)

    acc_ref[...] += jnp.dot(x_ref[...], w_ref[...], preferred_element_type=jnp.float32)

    @pl.when(k == pl.num_programs(1) - 1)
    def _():
        y = acc_ref[...] + b_ref[...].astype(jnp.float32)
        if act == "gelu":
            y = _gelu_exact(y)
        if has_residual:
            y = y + r_ref[...].astype(jnp.float32)
        mu = jnp.mean(y, axis=-1, keepdims=True)
        var = jnp.mean(jnp.square(y - mu), axis=-1, keepdims=True)
        y = (y - mu) * jax.lax.rsqrt(var + eps)
        o_ref[...] = (y * g_ref[...].astype(jnp.float32)
                      + bt_ref[...].astype(jnp.float32)).astype(o_ref.dtype)


def _attn_kernel(q_ref, k_ref, v_ref, m_ref, o_ref, *, scale, head_dim, heads_per_block):
    """Attention for one (batch, head-group) block, channel-last layout.

    q_ref/k_ref/v_ref: (1, S, group*Dh); mask: (1, Sq, Sk) additive, shared over heads.
    """
    # TODO(synk): for very long sequences, tile Sk flash-style (running max/denominator).
    mask = m_ref[0].astype(jnp.float32)                       # (Sq, Sk)
    outs = []
    for h in range(heads_per_block):
        sl = pl.ds(h * head_dim, head_dim)
        q = q_ref[0, :, sl]                                    # (Sq, Dh) bf16
        k = k_ref[0, :, sl]                                    # (Sk, Dh) bf16
        v = v_ref[0, :, sl]                                    # (Sk, Dh) bf16
        s = jax.lax.dot_general(q, k, (((1,), (1,)), ((), ())),
                                preferred_element_type=jnp.float32)
        s = s * scale + mask
        s = jnp.maximum(s, NEG_INF)                            # guard fully-masked rows
        s = s - jnp.max(s, axis=-1, keepdims=True)
        p = jnp.exp(s)
        p = p * pl.reciprocal(jnp.sum(p, axis=-1, keepdims=True), approx=True)
        outs.append(jnp.dot(p.astype(v.dtype), v, preferred_element_type=jnp.float32))
    ctx = outs[0] if len(outs) == 1 else jnp.concatenate(outs, axis=-1)
    o_ref[0] = ctx.astype(o_ref.dtype)                         # single lane-dense store


# ----------------------------- Pallas wrappers ------------------------------

def matmul_bias(x, w, b, activation="none", out_dtype=None):
    """x: (M,K) @ w: (K,N) + b, optional fused GELU. Tiled & pipelined, f32 accumulation."""
    M, K = x.shape
    N = w.shape[1]
    out_dtype = out_dtype or x.dtype
    tm, tn, tk = _mm_tiles(M, K, N, x.dtype.itemsize, w.dtype.itemsize,
                           jnp.dtype(out_dtype).itemsize, TILE_BUDGET)
    grid = (M // tm, N // tn, K // tk)
    return pl.pallas_call(
        functools.partial(_mm_kernel, act=activation),
        out_shape=jax.ShapeDtypeStruct((M, N), out_dtype),
        grid=grid,
        in_specs=[
            pl.BlockSpec((tm, tk), lambda i, j, k: (i, k)),
            pl.BlockSpec((tk, tn), lambda i, j, k: (k, j)),
            pl.BlockSpec((1, tn), lambda i, j, k: (0, j)),
        ],
        out_specs=pl.BlockSpec((tm, tn), lambda i, j, k: (i, j)),
        scratch_shapes=[pltpu.VMEM((tm, tn), jnp.float32)],
        compiler_params=pltpu.CompilerParams(
            dimension_semantics=("parallel", "parallel", "arbitrary"),
            vmem_limit_bytes=VMEM_LIMIT),
    )(x, w, b.reshape(1, N))


def matmul_bias_ln(x, w, b, gamma, beta, residual, eps, activation="none", out_dtype=None):
    """LayerNorm(act(x @ w + b) [+ residual]); N untiled so LN sees full rows."""
    M, K = x.shape
    N = w.shape[1]
    out_dtype = out_dtype or x.dtype
    has_res = residual is not None
    tm, tk = _mm_ln_tiles(M, K, N, x.dtype.itemsize, w.dtype.itemsize,
                          residual.dtype.itemsize if has_res else 0,
                          jnp.dtype(out_dtype).itemsize, TILE_BUDGET)
    grid = (M // tm, K // tk)
    in_specs = [
        pl.BlockSpec((tm, tk), lambda i, k: (i, k)),
        pl.BlockSpec((tk, N), lambda i, k: (k, 0)),
        pl.BlockSpec((1, N), lambda i, k: (0, 0)),
        pl.BlockSpec((1, N), lambda i, k: (0, 0)),
        pl.BlockSpec((1, N), lambda i, k: (0, 0)),
    ]
    args = [x, w, b.reshape(1, N), gamma.reshape(1, N), beta.reshape(1, N)]
    if has_res:
        in_specs.append(pl.BlockSpec((tm, N), lambda i, k: (i, 0)))
        args.append(residual)
    return pl.pallas_call(
        functools.partial(_mm_ln_kernel, eps=eps, act=activation, has_residual=has_res),
        out_shape=jax.ShapeDtypeStruct((M, N), out_dtype),
        grid=grid,
        in_specs=in_specs,
        out_specs=pl.BlockSpec((tm, N), lambda i, k: (i, 0)),
        scratch_shapes=[pltpu.VMEM((tm, N), jnp.float32)],
        compiler_params=pltpu.CompilerParams(
            dimension_semantics=("parallel", "arbitrary"),
            vmem_limit_bytes=VMEM_LIMIT),
    )(*args)


def _pick_head_group(num_heads, head_dim, sq, sk):
    """Largest head group whose q/k/v/out double buffers + score tile fit the budget and
    whose block last dim satisfies the (·,128) rule (multiple of 128, or all heads)."""
    budget = min(TILE_BUDGET, 8 * 1024 * 1024)

    def legal(g):
        return num_heads % g == 0 and (g == num_heads or (g * head_dim) % 128 == 0)

    def cost(g):
        blk = g * head_dim
        return (2 * 2 * blk * (sq + 2 * sk)      # double-buffered bf16 q, k, v blocks
                + 2 * 2 * sq * blk               # double-buffered bf16 out block
                + 2 * 4 * sq * sk                # double-buffered f32 mask block
                + 4 * sq * sk + 4 * sq * blk)    # f32 scores + f32 ctx working set

    for g in range(num_heads, 0, -1):
        if legal(g) and cost(g) <= budget:
            return g
    return min(g for g in range(1, num_heads + 1) if legal(g))


def attention(q, k, v, mask, scale, *, num_heads, out_dtype=None):
    """q: (B,Sq,H), k/v: (B,Sk,H) channel-last; mask: (B,Sq,Sk) additive (shared over heads)."""
    B, Sq, H = q.shape
    Sk = k.shape[1]
    Dh = H // num_heads
    out_dtype = out_dtype or q.dtype
    Gh = _pick_head_group(num_heads, Dh, Sq, Sk)
    blk = Gh * Dh
    G = num_heads // Gh
    return pl.pallas_call(
        functools.partial(_attn_kernel, scale=scale, head_dim=Dh, heads_per_block=Gh),
        out_shape=jax.ShapeDtypeStruct((B, Sq, H), out_dtype),
        grid=(B, G),
        in_specs=[
            pl.BlockSpec((1, Sq, blk), lambda b, g: (b, 0, g)),
            pl.BlockSpec((1, Sk, blk), lambda b, g: (b, 0, g)),
            pl.BlockSpec((1, Sk, blk), lambda b, g: (b, 0, g)),
            pl.BlockSpec((1, Sq, Sk), lambda b, g: (b, 0, 0)),
        ],
        out_specs=pl.BlockSpec((1, Sq, blk), lambda b, g: (b, 0, g)),
        compiler_params=pltpu.CompilerParams(
            dimension_semantics=("parallel", "parallel"),
            vmem_limit_bytes=VMEM_LIMIT),
    )(q, k, v, mask)


# ----------------------------- parameter init ------------------------------

def _normal(key, shape, std=0.02):
    return std * jax.random.normal(key, shape, dtype=jnp.float32)


def init_attention_params(key, hidden, fused):
    """fused='qkv' for self-attention, 'kv' for cross-attention (pre-concatenated weights)."""
    ks = jax.random.split(key, 4)
    wq, wk, wv, wo = (_normal(ks[i], (hidden, hidden)) for i in range(4))
    p = {"w_o": wo.astype(PARAM_DTYPE), "b_o": jnp.zeros((hidden,), jnp.float32),
         "ln_g": jnp.ones((hidden,), jnp.float32), "ln_b": jnp.zeros((hidden,), jnp.float32)}
    if fused == "qkv":
        p["w_qkv"] = jnp.concatenate([wq, wk, wv], axis=1).astype(PARAM_DTYPE)
        p["b_qkv"] = jnp.zeros((3 * hidden,), jnp.float32)
    else:
        p["w_q"] = wq.astype(PARAM_DTYPE)
        p["b_q"] = jnp.zeros((hidden,), jnp.float32)
        p["w_kv"] = jnp.concatenate([wk, wv], axis=1).astype(PARAM_DTYPE)
        p["b_kv"] = jnp.zeros((2 * hidden,), jnp.float32)
    return p


def init_ffn_params(key, hidden, intermediate):
    k1, k2 = jax.random.split(key)
    return {"w1": _normal(k1, (hidden, intermediate)).astype(PARAM_DTYPE),
            "b1": jnp.zeros((intermediate,), jnp.float32),
            "w2": _normal(k2, (intermediate, hidden)).astype(PARAM_DTYPE),
            "b2": jnp.zeros((hidden,), jnp.float32),
            "ln_g": jnp.ones((hidden,), jnp.float32),
            "ln_b": jnp.zeros((hidden,), jnp.float32)}


def init_encoder_params(key, cfg):
    keys = jax.random.split(key, 2 + cfg["num_layers"])
    layers = []
    for i in range(cfg["num_layers"]):
        ka, kf = jax.random.split(keys[2 + i])
        layers.append({"attn": init_attention_params(ka, cfg["hidden_size"], fused="qkv"),
                       "ffn": init_ffn_params(kf, cfg["hidden_size"], cfg["intermediate_size"])})
    return {"word_emb": _normal(keys[0], (cfg["vocab_size"], cfg["hidden_size"])).astype(ACT_DTYPE),
            "pos_emb": _normal(keys[1], (cfg["max_position_embeddings"], cfg["hidden_size"])).astype(ACT_DTYPE),
            "layers": layers}


def init_decoder_params(key, cfg):
    keys = jax.random.split(key, 2 + cfg["num_layers"])
    layers = []
    for i in range(cfg["num_layers"]):
        ka, kc, kf = jax.random.split(keys[2 + i], 3)
        layers.append({"self_attn": init_attention_params(ka, cfg["hidden_size"], fused="qkv"),
                       "cross_attn": init_attention_params(kc, cfg["hidden_size"], fused="kv"),
                       "ffn": init_ffn_params(kf, cfg["hidden_size"], cfg["intermediate_size"])})
    return {"word_emb": _normal(keys[0], (cfg["vocab_size"], cfg["hidden_size"])).astype(ACT_DTYPE),
            "pos_emb": _normal(keys[1], (cfg["max_position_embeddings"], cfg["hidden_size"])).astype(ACT_DTYPE),
            "layers": layers}


def init_lm_head_params(key, cfg):
    k1, k2 = jax.random.split(key)
    H, V = cfg["hidden_size"], cfg["vocab_size"]
    return {"dense_w": _normal(k1, (H, H)).astype(PARAM_DTYPE),
            "dense_b": jnp.zeros((H,), jnp.float32),
            "ln_g": jnp.ones((H,), jnp.float32),
            "ln_b": jnp.zeros((H,), jnp.float32),
            "vocab_w": _normal(k2, (H, V)).astype(PARAM_DTYPE),
            "vocab_b": jnp.zeros((V,), jnp.float32)}   # self.bias = zeros, tied to vocab.bias


# ----------------------------- model forward -------------------------------

def mha(p, hq, hkv, mask3d, num_heads, ln_eps, self_attn):
    """Multi-head attention block: LN(Wo(softmax(qk/sqrt(d)+mask)v) + hq)."""
    B, Sq, H = hq.shape
    Sk = hkv.shape[1]
    Dh = H // num_heads
    x_q = hq.reshape(B * Sq, H)
    if self_attn:
        qkv = matmul_bias(x_q, p["w_qkv"], p["b_qkv"]).reshape(B, Sq, 3 * H)
        # TODO(synk): when (group*Dh) % 128 == 0, the fused qkv could be fed to the
        # attention kernel directly via index_map column offsets, skipping these slices.
        q, k, v = qkv[:, :, :H], qkv[:, :, H:2 * H], qkv[:, :, 2 * H:]
    else:
        x_kv = hkv.reshape(B * Sk, H)
        q = matmul_bias(x_q, p["w_q"], p["b_q"]).reshape(B, Sq, H)
        kv = matmul_bias(x_kv, p["w_kv"], p["b_kv"]).reshape(B, Sk, 2 * H)
        k, v = kv[:, :, :H], kv[:, :, H:]
    ctx = attention(q, k, v, mask3d, 1.0 / (Dh ** 0.5), num_heads=num_heads)   # (B, Sq, H)
    out = matmul_bias_ln(ctx.reshape(B * Sq, H), p["w_o"], p["b_o"], p["ln_g"], p["ln_b"],
                         residual=x_q, eps=ln_eps)
    return out.reshape(B, Sq, H)


def feed_forward(p, x, residual, ln_eps):
    B, S, H = x.shape
    h = matmul_bias(x.reshape(B * S, H), p["w1"], p["b1"], activation="gelu")
    out = matmul_bias_ln(h, p["w2"], p["b2"], p["ln_g"], p["ln_b"],
                         residual=residual.reshape(B * S, H), eps=ln_eps)
    return out.reshape(B, S, H)


# TODO(synk): EncoderModel source was not provided; implemented as a standard post-LN
# transformer encoder following the same layer pattern as Seq2SeqDecoderLayer.
def encoder_forward(params, input_ids, attention_mask, cfg):
    B, S = input_ids.shape
    h = params["word_emb"][input_ids] + params["pos_emb"][None, :S, :]
    add_mask = (1.0 - attention_mask.astype(jnp.float32)) * NEG_INF           # (B, S)
    ext = jnp.broadcast_to(add_mask[:, None, :], (B, S, S))                   # (B, Sq, Sk)
    for lp in params["layers"]:
        attn_out = mha(lp["attn"], h, h, ext, cfg["num_heads"], cfg["ln_eps"], self_attn=True)
        h = feed_forward(lp["ffn"], attn_out, h, cfg["ln_eps"])
    return h


def create_mask_for_decoder(input_ids, attention_mask, start_pos=0):
    # TODO(synk): start_pos > 0 (kv-cache incremental decoding) path not exercised here.
    B, S = input_ids.shape
    seq_ids = jnp.arange(S)
    causal = (seq_ids[None, :] <= seq_ids[:, None]).astype(jnp.float32)       # (S, S)
    if start_pos > 0:
        causal = jnp.concatenate([jnp.ones((S, start_pos), jnp.float32), causal], axis=-1)
    mask = causal[None, :, :] * attention_mask[:, None, :].astype(jnp.float32)  # (B, S, Sk)
    return mask


def decoder_forward(params, input_ids, attention_mask, enc_h, enc_add_mask, cfg, start_pos=0):
    B, S = input_ids.shape
    S_enc = enc_h.shape[1]
    h = params["word_emb"][input_ids] + params["pos_emb"][None, start_pos:start_pos + S, :]
    mask = create_mask_for_decoder(input_ids, attention_mask, start_pos)
    mask = (1.0 - mask) * NEG_INF                                             # (B, S, S)
    cross_mask = jnp.broadcast_to(enc_add_mask[:, None, :], (B, S, S_enc))    # (B, S, S_enc)
    for lp in params["layers"]:
        out = mha(lp["self_attn"], h, h, mask, cfg["num_heads"], cfg["ln_eps"], self_attn=True)
        out = mha(lp["cross_attn"], out, enc_h, cross_mask, cfg["num_heads"], cfg["ln_eps"],
                  self_attn=False)
        h = feed_forward(lp["ffn"], out, h, cfg["ln_eps"])
    return h


def lm_head_forward(p, h, ln_eps):
    B, S, H = h.shape
    # dense + GELU + LayerNorm fused into one kernel (no residual, no zeros tensor).
    x = matmul_bias_ln(h.reshape(B * S, H), p["dense_w"], p["dense_b"],
                       p["ln_g"], p["ln_b"], residual=None, eps=ln_eps, activation="gelu")
    logits = matmul_bias(x, p["vocab_w"], p["vocab_b"], out_dtype=jnp.float32)
    return logits.reshape(B, S, -1)


def encoder_decoder_forward(params, input_ids, attention_mask,
                            decoder_input_ids, decoder_attention_mask,
                            cfg_enc, cfg_dec):
    encoder_output = encoder_forward(params["encoder"], input_ids, attention_mask, cfg_enc)
    # encoder mask for cross attention: (1 - m) * finfo.min, kept as (B, S_enc) f32
    enc_add_mask = (1.0 - attention_mask.astype(jnp.float32)) * NEG_INF
    decoder_output = decoder_forward(params["decoder"], decoder_input_ids,
                                     decoder_attention_mask, encoder_output,
                                     enc_add_mask, cfg_dec, start_pos=0)
    logits = lm_head_forward(params["lm_head"], decoder_output, cfg_dec["lm_ln_eps"])
    return {"logits": logits, "key_value_states": encoder_output}


# --------------------------------- main -------------------------------------

if __name__ == "__main__":
    cfg_enc = dict(vocab_size=64, hidden_size=32, num_heads=4, num_layers=2,
                   intermediate_size=64, max_position_embeddings=16, ln_eps=1e-12)
    cfg_dec = dict(vocab_size=64, hidden_size=32, num_heads=4, num_layers=2,
                   intermediate_size=64, max_position_embeddings=16, ln_eps=1e-12,
                   lm_ln_eps=1e-6)

    key = jax.random.PRNGKey(0)
    k_enc, k_dec, k_lm, k_in1, k_in2 = jax.random.split(key, 5)
    params = {
        "encoder": init_encoder_params(k_enc, cfg_enc),
        "decoder": init_decoder_params(k_dec, cfg_dec),
        "lm_head": init_lm_head_params(k_lm, cfg_dec),
    }

    B, S_enc, S_dec = 2, 8, 8
    input_ids = jax.random.randint(k_in1, (B, S_enc), 0, cfg_enc["vocab_size"])
    decoder_input_ids = jax.random.randint(k_in2, (B, S_dec), 0, cfg_dec["vocab_size"])
    attention_mask = jnp.ones((B, S_enc), jnp.float32)
    decoder_attention_mask = jnp.ones((B, S_dec), jnp.float32)

    fwd = jax.jit(lambda prm, a, b, c, d: encoder_decoder_forward(
        prm, a, b, c, d, cfg_enc, cfg_dec))
    out = fwd(params, input_ids, attention_mask, decoder_input_ids, decoder_attention_mask)
    jax.block_until_ready(out["logits"])
    assert out["logits"].shape == (B, S_dec, cfg_dec["vocab_size"])
    assert out["key_value_states"].shape == (B, S_enc, cfg_enc["hidden_size"])
    print("KERNEL_OK")
</pallas_src>

<mosaic_0001>
module attributes {stable_mosaic.version = 11 : i64} {
  func.func @_mm_kernel(%arg0: i32, %arg1: i32, %arg2: i32, %arg3: memref<8x32xbf16, #tpu.memory_space<vmem>>, %arg4: memref<32x96xbf16, #tpu.memory_space<vmem>>, %arg5: memref<1x96xf32, #tpu.memory_space<vmem>>, %arg6: memref<8x96xbf16, #tpu.memory_space<vmem>>, %arg7: memref<8x96xf32, #tpu.memory_space<vmem>>) attributes {dimension_semantics = [#tpu.dimension_semantics<parallel>, #tpu.dimension_semantics<parallel>, #tpu.dimension_semantics<arbitrary>], iteration_bounds = array<i64: 2, 1, 1>, scalar_prefetch = 0 : i64, scratch_operands = 1 : i64, tpu.core_type = #tpu.core_type<tc>, window_params = [{transform_indices = @transform_0, window_bounds = array<i64: 8, 32>}, {transform_indices = @transform_1, window_bounds = array<i64: 32, 96>}, {transform_indices = @transform_2, window_bounds = array<i64: 1, 96>}, {transform_indices = @transform_3, window_bounds = array<i64: 8, 96>}]} {
    %c0_i32 = arith.constant 0 : i32
    %0 = arith.cmpi eq, %arg2, %c0_i32 : i32
    %1 = arith.extui %0 : i1 to i32
    %c0_i32_0 = arith.constant 0 : i32
    %2 = arith.cmpi ne, %1, %c0_i32_0 : i32
    scf.if %2 {
      %cst_10 = arith.constant 0.000000e+00 : f32
      %12 = vector.broadcast %cst_10 : f32 to vector<8x96xf32>
      %c0_11 = arith.constant 0 : index
      %c0_12 = arith.constant 0 : index
      %13 = vector.load %arg7[%c0_11, %c0_12] : memref<8x96xf32, #tpu.memory_space<vmem>>, vector<8x96xf32>
      tpu.vector_store %arg7[%c0_11, %c0_12], %12 {strides = array<i32>} : memref<8x96xf32, #tpu.memory_space<vmem>>, vector<8x96xf32>,
    } else {
    }
    %c0 = arith.constant 0 : index
    %c0_1 = arith.constant 0 : index
    %3 = vector.load %arg7[%c0, %c0_1] : memref<8x96xf32, #tpu.memory_space<vmem>>, vector<8x96xf32>
    %c0_2 = arith.constant 0 : index
    %c0_3 = arith.constant 0 : index
    %4 = vector.load %arg3[%c0_2, %c0_3] : memref<8x32xbf16, #tpu.memory_space<vmem>>, vector<8x32xbf16>
    %c0_4 = arith.constant 0 : index
    %c0_5 = arith.constant 0 : index
    %5 = vector.load %arg4[%c0_4, %c0_5] : memref<32x96xbf16, #tpu.memory_space<vmem>>, vector<32x96xbf16>
    %cst = arith.constant dense<0.000000e+00> : vector<8x96xf32>
    %6 = tpu.matmul %4, %5, %cst {dimension_numbers = #tpu.dot_dimension_numbers<[1], [0], [0], [1], [0, 0, 1, 1], [], []>} : vector<8x32xbf16>, vector<32x96xbf16>, vector<8x96xf32> -> vector<8x96xf32>
    %7 = arith.addf %3, %6 : vector<8x96xf32>
    %c0_6 = arith.constant 0 : index
    %c0_7 = arith.constant 0 : index
    %8 = vector.load %arg7[%c0_6, %c0_7] : memref<8x96xf32, #tpu.memory_space<vmem>>, vector<8x96xf32>
    tpu.vector_store %arg7[%c0_6, %c0_7], %7 {strides = array<i32>} : memref<8x96xf32, #tpu.memory_space<vmem>>, vector<8x96xf32>,
    %c0_i32_8 = arith.constant 0 : i32
    %9 = arith.cmpi eq, %arg2, %c0_i32_8 : i32
    %10 = arith.extui %9 : i1 to i32
    %c0_i32_9 = arith.constant 0 : i32
    %11 = arith.cmpi ne, %10, %c0_i32_9 : i32
    scf.if %11 {
      %c0_10 = arith.constant 0 : index
      %c0_11 = arith.constant 0 : index
      %12 = vector.load %arg7[%c0_10, %c0_11] : memref<8x96xf32, #tpu.memory_space<vmem>>, vector<8x96xf32>
      %c0_12 = arith.constant 0 : index
      %c0_13 = arith.constant 0 : index
      %13 = vector.load %arg5[%c0_12, %c0_13] : memref<1x96xf32, #tpu.memory_space<vmem>>, vector<1x96xf32>
      %14 = vector.broadcast %13 : vector<1x96xf32> to vector<8x96xf32>
      %15 = arith.addf %12, %14 : vector<8x96xf32>
      %16 = arith.truncf %15 : vector<8x96xf32> to vector<8x96xbf16>
      %c0_14 = arith.constant 0 : index
      %c0_15 = arith.constant 0 : index
      %17 = vector.load %arg6[%c0_14, %c0_15] : memref<8x96xbf16, #tpu.memory_space<vmem>>, vector<8x96xbf16>
      tpu.vector_store %arg6[%c0_14, %c0_15], %16 {strides = array<i32>} : memref<8x96xbf16, #tpu.memory_space<vmem>>, vector<8x96xbf16>,
    } else {
    }
    return
  }
  func.func @transform_0(%arg0: i32, %arg1: i32, %arg2: i32) -> (i32, i32) {
    %c0_i32 = arith.constant 0 : i32
    return %arg0, %arg2 : i32, i32
  }
  func.func @transform_1(%arg0: i32, %arg1: i32, %arg2: i32) -> (i32, i32) {
    %c0_i32 = arith.constant 0 : i32
    return %arg2, %arg1 : i32, i32
  }
  func.func @transform_2(%arg0: i32, %arg1: i32, %arg2: i32) -> (i32, i32) {
    %c0_i32 = arith.constant 0 : i32
    %c0_i32_0 = arith.constant 0 : i32
    return %c0_i32, %arg1 : i32, i32
  }
  func.func @transform_3(%arg0: i32, %arg1: i32, %arg2: i32) -> (i32, i32) {
    %c0_i32 = arith.constant 0 : i32
    return %arg0, %arg1 : i32, i32
  }
}

module attributes {stable_mosaic.version = 11 : i64} {
  func.func @_mm_ln_kernel(%arg0: i32, %arg1: i32, %arg2: memref<8x32xbf16, #tpu.memory_space<vmem>>, %arg3: memref<32x32xbf16, #tpu.memory_space<vmem>>, %arg4: memref<1x32xf32, #tpu.memory_space<vmem>>, %arg5: memref<1x32xf32, #tpu.memory_space<vmem>>, %arg6: memref<1x32xf32, #tpu.memory_space<vmem>>, %arg7: memref<8x32xbf16, #tpu.memory_space<vmem>>, %arg8: memref<8x32xbf16, #tpu.memory_space<vmem>>, %arg9: memref<8x32xf32, #tpu.memory_space<vmem>>) attributes {dimension_semantics = [#tpu.dimension_semantics<parallel>, #tpu.dimension_semantics<arbitrary>], iteration_bounds = array<i64: 2, 1>, scalar_prefetch = 0 : i64, scratch_operands = 1 : i64, tpu.core_type = #tpu.core_type<tc>, window_params = [{transform_indices = @transform_0, window_bounds = array<i64: 8, 32>}, {transform_indices = @transform_1, window_bounds = array<i64: 32, 32>}, {pipeline_mode = #tpu.pipeline_mode<synchronous>, transform_indices = @transform_2, window_bounds = array<i64: 1, 32>}, {pipeline_mode = #tpu.pipeline_mode<synchronous>, transform_indices = @transform_3, window_bounds = array<i64: 1, 32>}, {pipeline_mode = #tpu.pipeline_mode<synchronous>, transform_indices = @transform_4, window_bounds = array<i64: 1, 32>}, {transform_indices = @transform_5, window_bounds = array<i64: 8, 32>}, {transform_indices = @transform_6, window_bounds = array<i64: 8, 32>}]} {
    %c0_i32 = arith.constant 0 : i32
    %0 = arith.cmpi eq, %arg1, %c0_i32 : i32
    %1 = arith.extui %0 : i1 to i32
    %c0_i32_0 = arith.constant 0 : i32
    %2 = arith.cmpi ne, %1, %c0_i32_0 : i32
    scf.if %2 {
      %cst_10 = arith.constant 0.000000e+00 : f32
      %12 = vector.broadcast %cst_10 : f32 to vector<8x32xf32>
      %c0_11 = arith.constant 0 : index
      %c0_12 = arith.constant 0 : index
      %13 = vector.load %arg9[%c0_11, %c0_12] : memref<8x32xf32, #tpu.memory_space<vmem>>, vector<8x32xf32>
      tpu.vector_store %arg9[%c0_11, %c0_12], %12 {strides = array<i32>} : memref<8x32xf32, #tpu.memory_space<vmem>>, vector<8x32xf32>,
    } else {
    }
    %c0 = arith.constant 0 : index
    %c0_1 = arith.constant 0 : index
    %3 = vector.load %arg9[%c0, %c0_1] : memref<8x32xf32, #tpu.memory_space<vmem>>, vector<8x32xf32>
    %c0_2 = arith.constant 0 : index
    %c0_3 = arith.constant 0 : index
    %4 = vector.load %arg2[%c0_2, %c0_3] : memref<8x32xbf16, #tpu.memory_space<vmem>>, vector<8x32xbf16>
    %c0_4 = arith.constant 0 : index
    %c0_5 = arith.constant 0 : index
    %5 = vector.load %arg3[%c0_4, %c0_5] : memref<32x32xbf16, #tpu.memory_space<vmem>>, vector<32x32xbf16>
    %cst = arith.constant dense<0.000000e+00> : vector<8x32xf32>
    %6 = tpu.matmul %4, %5, %cst {dimension_numbers = #tpu.dot_dimension_numbers<[1], [0], [0], [1], [0, 0, 1, 1], [], []>} : vector<8x32xbf16>, vector<32x32xbf16>, vector<8x32xf32> -> vector<8x32xf32>
    %7 = arith.addf %3, %6 : vector<8x32xf32>
    %c0_6 = arith.constant 0 : index
    %c0_7 = arith.constant 0 : index
    %8 = vector.load %arg9[%c0_6, %c0_7] : memref<8x32xf32, #tpu.memory_space<vmem>>, vector<8x32xf32>
    tpu.vector_store %arg9[%c0_6, %c0_7], %7 {strides = array<i32>} : memref<8x32xf32, #tpu.memory_space<vmem>>, vector<8x32xf32>,
    %c0_i32_8 = arith.constant 0 : i32
    %9 = arith.cmpi eq, %arg1, %c0_i32_8 : i32
    %10 = arith.extui %9 : i1 to i32
    %c0_i32_9 = arith.constant 0 : i32
    %11 = arith.cmpi ne, %10, %c0_i32_9 : i32
    scf.if %11 {
      %c0_10 = arith.constant 0 : index
      %c0_11 = arith.constant 0 : index
      %12 = vector.load %arg9[%c0_10, %c0_11] : memref<8x32xf32, #tpu.memory_space<vmem>>, vector<8x32xf32>
      %c0_12 = arith.constant 0 : index
      %c0_13 = arith.constant 0 : index
      %13 = vector.load %arg4[%c0_12, %c0_13] : memref<1x32xf32, #tpu.memory_space<vmem>>, vector<1x32xf32>
      %14 = vector.broadcast %13 : vector<1x32xf32> to vector<8x32xf32>
      %15 = arith.addf %12, %14 : vector<8x32xf32>
      %c0_14 = arith.constant 0 : index
      %c0_15 = arith.constant 0 : index
      %16 = vector.load %arg7[%c0_14, %c0_15] : memref<8x32xbf16, #tpu.memory_space<vmem>>, vector<8x32xbf16>
      %17 = arith.extf %16 : vector<8x32xbf16> to vector<8x32xf32>
      %18 = arith.addf %15, %17 : vector<8x32xf32>
      %cst_16 = arith.constant dense<0.000000e+00> : vector<8xf32>
      %19 = vector.multi_reduction <add>, %18, %cst_16 [1] : vector<8x32xf32> to vector<8xf32>
      %20 = vector.shape_cast %19 : vector<8xf32> to vector<8x1xf32>
      %cst_17 = arith.constant 3.200000e+01 : f32
      %21 = vector.broadcast %cst_17 : f32 to vector<8x1xf32>
      %22 = arith.divf %20, %21 : vector<8x1xf32>
      %23 = vector.broadcast %22 : vector<8x1xf32> to vector<8x32xf32>
      %24 = arith.subf %18, %23 : vector<8x32xf32>
      %25 = arith.mulf %24, %24 : vector<8x32xf32>
      %cst_18 = arith.constant dense<0.000000e+00> : vector<8xf32>
      %26 = vector.multi_reduction <add>, %25, %cst_18 [1] : vector<8x32xf32> to vector<8xf32>
      %27 = vector.shape_cast %26 : vector<8xf32> to vector<8x1xf32>
      %cst_19 = arith.constant 3.200000e+01 : f32
      %28 = vector.broadcast %cst_19 : f32 to vector<8x1xf32>
      %29 = arith.divf %27, %28 : vector<8x1xf32>
      %30 = vector.broadcast %22 : vector<8x1xf32> to vector<8x32xf32>
      %31 = arith.subf %18, %30 : vector<8x32xf32>
      %cst_20 = arith.constant 9.99999996E-13 : f32
      %32 = vector.broadcast %cst_20 : f32 to vector<8x1xf32>
      %33 = arith.addf %29, %32 : vector<8x1xf32>
      %34 = math.rsqrt %33 : vector<8x1xf32>
      %35 = vector.broadcast %34 : vector<8x1xf32> to vector<8x32xf32>
      %36 = arith.mulf %31, %35 : vector<8x32xf32>
      %c0_21 = arith.constant 0 : index
      %c0_22 = arith.constant 0 : index
      %37 = vector.load %arg5[%c0_21, %c0_22] : memref<1x32xf32, #tpu.memory_space<vmem>>, vector<1x32xf32>
      %38 = vector.broadcast %37 : vector<1x32xf32> to vector<8x32xf32>
      %39 = arith.mulf %36, %38 : vector<8x32xf32>
      %c0_23 = arith.constant 0 : index
      %c0_24 = arith.constant 0 : index
      %40 = vector.load %arg6[%c0_23, %c0_24] : memref<1x32xf32, #tpu.memory_space<vmem>>, vector<1x32xf32>
      %41 = vector.broadcast %40 : vector<1x32xf32> to vector<8x32xf32>
      %42 = arith.addf %39, %41 : vector<8x32xf32>
      %43 = arith.truncf %42 : vector<8x32xf32> to vector<8x32xbf16>
      %c0_25 = arith.constant 0 : index
      %c0_26 = arith.constant 0 : index
      %44 = vector.load %arg8[%c0_25, %c0_26] : memref<8x32xbf16, #tpu.memory_space<vmem>>, vector<8x32xbf16>
      tpu.vector_store %arg8[%c0_25, %c0_26], %43 {strides = array<i32>} : memref<8x32xbf16, #tpu.memory_space<vmem>>, vector<8x32xbf16>,
    } else {
    }
    return
  }
  func.func @transform_0(%arg0: i32, %arg1: i32) -> (i32, i32) {
    %c0_i32 = arith.constant 0 : i32
    return %arg0, %arg1 : i32, i32
  }
  func.func @transform_1(%arg0: i32, %arg1: i32) -> (i32, i32) {
    %c0_i32 = arith.constant 0 : i32
    %c0_i32_0 = arith.constant 0 : i32
    return %arg1, %c0_i32 : i32, i32
  }
  func.func @transform_2(%arg0: i32, %arg1: i32) -> (i32, i32) {
    %c0_i32 = arith.constant 0 : i32
    %c0_i32_0 = arith.constant 0 : i32
    %c0_i32_1 = arith.constant 0 : i32
    return %c0_i32, %c0_i32_0 : i32, i32
  }
  func.func @transform_3(%arg0: i32, %arg1: i32) -> (i32, i32) {
    %c0_i32 = arith.constant 0 : i32
    %c0_i32_0 = arith.constant 0 : i32
    %c0_i32_1 = arith.constant 0 : i32
    return %c0_i32, %c0_i32_0 : i32, i32
  }
  func.func @transform_4(%arg0: i32, %arg1: i32) -> (i32, i32) {
    %c0_i32 = arith.constant 0 : i32
    %c0_i32_0 = arith.constant 0 : i32
    %c0_i32_1 = arith.constant 0 : i32
    return %c0_i32, %c0_i32_0 : i32, i32
  }
  func.func @transform_5(%arg0: i32, %arg1: i32) -> (i32, i32) {
    %c0_i32 = arith.constant 0 : i32
    %c0_i32_0 = arith.constant 0 : i32
    return %arg0, %c0_i32 : i32, i32
  }
  func.func @transform_6(%arg0: i32, %arg1: i32) -> (i32, i32) {
    %c0_i32 = arith.constant 0 : i32
    %c0_i32_0 = arith.constant 0 : i32
    return %arg0, %c0_i32 : i32, i32
  }
}

module attributes {stable_mosaic.version = 11 : i64} {
  func.func @_mm_kernel(%arg0: i32, %arg1: i32, %arg2: i32, %arg3: memref<8x32xbf16, #tpu.memory_space<vmem>>, %arg4: memref<32x64xbf16, #tpu.memory_space<vmem>>, %arg5: memref<1x64xf32, #tpu.memory_space<vmem>>, %arg6: memref<8x64xbf16, #tpu.memory_space<vmem>>, %arg7: memref<8x64xf32, #tpu.memory_space<vmem>>) attributes {dimension_semantics = [#tpu.dimension_semantics<parallel>, #tpu.dimension_semantics<parallel>, #tpu.dimension_semantics<arbitrary>], iteration_bounds = array<i64: 2, 1, 1>, scalar_prefetch = 0 : i64, scratch_operands = 1 : i64, tpu.core_type = #tpu.core_type<tc>, window_params = [{transform_indices = @transform_0, window_bounds = array<i64: 8, 32>}, {transform_indices = @transform_1, window_bounds = array<i64: 32, 64>}, {transform_indices = @transform_2, window_bounds = array<i64: 1, 64>}, {transform_indices = @transform_3, window_bounds = array<i64: 8, 64>}]} {
    %c0_i32 = arith.constant 0 : i32
    %0 = arith.cmpi eq, %arg2, %c0_i32 : i32
    %1 = arith.extui %0 : i1 to i32
    %c0_i32_0 = arith.constant 0 : i32
    %2 = arith.cmpi ne, %1, %c0_i32_0 : i32
    scf.if %2 {
      %cst_10 = arith.constant 0.000000e+00 : f32
      %12 = vector.broadcast %cst_10 : f32 to vector<8x64xf32>
      %c0_11 = arith.constant 0 : index
      %c0_12 = arith.constant 0 : index
      %13 = vector.load %arg7[%c0_11, %c0_12] : memref<8x64xf32, #tpu.memory_space<vmem>>, vector<8x64xf32>
      tpu.vector_store %arg7[%c0_11, %c0_12], %12 {strides = array<i32>} : memref<8x64xf32, #tpu.memory_space<vmem>>, vector<8x64xf32>,
    } else {
    }
    %c0 = arith.constant 0 : index
    %c0_1 = arith.constant 0 : index
    %3 = vector.load %arg7[%c0, %c0_1] : memref<8x64xf32, #tpu.memory_space<vmem>>, vector<8x64xf32>
    %c0_2 = arith.constant 0 : index
    %c0_3 = arith.constant 0 : index
    %4 = vector.load %arg3[%c0_2, %c0_3] : memref<8x32xbf16, #tpu.memory_space<vmem>>, vector<8x32xbf16>
    %c0_4 = arith.constant 0 : index
    %c0_5 = arith.constant 0 : index
    %5 = vector.load %arg4[%c0_4, %c0_5] : memref<32x64xbf16, #tpu.memory_space<vmem>>, vector<32x64xbf16>
    %cst = arith.constant dense<0.000000e+00> : vector<8x64xf32>
    %6 = tpu.matmul %4, %5, %cst {dimension_numbers = #tpu.dot_dimension_numbers<[1], [0], [0], [1], [0, 0, 1, 1], [], []>} : vector<8x32xbf16>, vector<32x64xbf16>, vector<8x64xf32> -> vector<8x64xf32>
    %7 = arith.addf %3, %6 : vector<8x64xf32>
    %c0_6 = arith.constant 0 : index
    %c0_7 = arith.constant 0 : index
    %8 = vector.load %arg7[%c0_6, %c0_7] : memref<8x64xf32, #tpu.memory_space<vmem>>, vector<8x64xf32>
    tpu.vector_store %arg7[%c0_6, %c0_7], %7 {strides = array<i32>} : memref<8x64xf32, #tpu.memory_space<vmem>>, vector<8x64xf32>,
    %c0_i32_8 = arith.constant 0 : i32
    %9 = arith.cmpi eq, %arg2, %c0_i32_8 : i32
    %10 = arith.extui %9 : i1 to i32
    %c0_i32_9 = arith.constant 0 : i32
    %11 = arith.cmpi ne, %10, %c0_i32_9 : i32
    scf.if %11 {
      %c0_10 = arith.constant 0 : index
      %c0_11 = arith.constant 0 : index
      %12 = vector.load %arg7[%c0_10, %c0_11] : memref<8x64xf32, #tpu.memory_space<vmem>>, vector<8x64xf32>
      %c0_12 = arith.constant 0 : index
      %c0_13 = arith.constant 0 : index
      %13 = vector.load %arg5[%c0_12, %c0_13] : memref<1x64xf32, #tpu.memory_space<vmem>>, vector<1x64xf32>
      %14 = vector.broadcast %13 : vector<1x64xf32> to vector<8x64xf32>
      %15 = arith.addf %12, %14 : vector<8x64xf32>
      %cst_14 = arith.constant 5.000000e-01 : f32
      %16 = vector.broadcast %cst_14 : f32 to vector<8x64xf32>
      %17 = arith.mulf %16, %15 : vector<8x64xf32>
      %cst_15 = arith.constant 0.707106769 : f32
      %18 = vector.broadcast %cst_15 : f32 to vector<8x64xf32>
      %19 = arith.mulf %15, %18 : vector<8x64xf32>
      %20 = math.absf %19 : vector<8x64xf32>
      %cst_16 = arith.constant 0.327591091 : f32
      %21 = vector.broadcast %cst_16 : f32 to vector<8x64xf32>
      %22 = arith.mulf %21, %20 : vector<8x64xf32>
      %cst_17 = arith.constant 1.000000e+00 : f32
      %23 = vector.broadcast %cst_17 : f32 to vector<8x64xf32>
      %24 = arith.addf %23, %22 : vector<8x64xf32>
      %cst_18 = arith.constant 1.000000e+00 : f32
      %25 = vector.broadcast %cst_18 : f32 to vector<8x64xf32>
      %26 = arith.divf %25, %24 : vector<8x64xf32>
      %cst_19 = arith.constant 1.06140542 : f32
      %27 = vector.broadcast %cst_19 : f32 to vector<8x64xf32>
      %28 = arith.mulf %27, %26 : vector<8x64xf32>
      %cst_20 = arith.constant -1.45315206 : f32
      %29 = vector.broadcast %cst_20 : f32 to vector<8x64xf32>
      %30 = arith.addf %28, %29 : vector<8x64xf32>
      %31 = arith.mulf %30, %26 : vector<8x64xf32>
      %cst_21 = arith.constant 1.42141378 : f32
      %32 = vector.broadcast %cst_21 : f32 to vector<8x64xf32>
      %33 = arith.addf %31, %32 : vector<8x64xf32>
      %34 = arith.mulf %33, %26 : vector<8x64xf32>
      %cst_22 = arith.constant -0.284496725 : f32
      %35 = vector.broadcast %cst_22 : f32 to vector<8x64xf32>
      %36 = arith.addf %34, %35 : vector<8x64xf32>
      %37 = arith.mulf %36, %26 : vector<8x64xf32>
      %cst_23 = arith.constant 0.254829586 : f32
      %38 = vector.broadcast %cst_23 : f32 to vector<8x64xf32>
      %39 = arith.addf %37, %38 : vector<8x64xf32>
      %40 = arith.mulf %39, %26 : vector<8x64xf32>
      %cst_24 = arith.constant 0.000000e+00 : f32
      %41 = vector.broadcast %cst_24 : f32 to vector<8x64xf32>
      %42 = arith.subf %41, %20 : vector<8x64xf32>
      %43 = arith.mulf %42, %20 : vector<8x64xf32>
      %44 = math.exp %43 : vector<8x64xf32>
      %45 = arith.mulf %40, %44 : vector<8x64xf32>
      %cst_25 = arith.constant 1.000000e+00 : f32
      %46 = vector.broadcast %cst_25 : f32 to vector<8x64xf32>
      %47 = arith.subf %46, %45 : vector<8x64xf32>
      %cst_26 = arith.constant 0.000000e+00 : f32
      %48 = vector.broadcast %cst_26 : f32 to vector<8x64xf32>
      %49 = arith.cmpf oge, %19, %48 : vector<8x64xf32>
      %cst_27 = arith.constant 0.000000e+00 : f32
      %50 = vector.broadcast %cst_27 : f32 to vector<8x64xf32>
      %51 = arith.subf %50, %47 : vector<8x64xf32>
      %52 = arith.select %49, %47, %51 : vector<8x64xi1>, vector<8x64xf32>
      %cst_28 = arith.constant 1.000000e+00 : f32
      %53 = vector.broadcast %cst_28 : f32 to vector<8x64xf32>
      %54 = arith.addf %53, %52 : vector<8x64xf32>
      %55 = arith.mulf %17, %54 : vector<8x64xf32>
      %56 = arith.truncf %55 : vector<8x64xf32> to vector<8x64xbf16>
      %c0_29 = arith.constant 0 : index
      %c0_30 = arith.constant 0 : index
      %57 = vector.load %arg6[%c0_29, %c0_30] : memref<8x64xbf16, #tpu.memory_space<vmem>>, vector<8x64xbf16>
      tpu.vector_store %arg6[%c0_29, %c0_30], %56 {strides = array<i32>} : memref<8x64xbf16, #tpu.memory_space<vmem>>, vector<8x64xbf16>,
    } else {
    }
    return
  }
  func.func @transform_0(%arg0: i32, %arg1: i32, %arg2: i32) -> (i32, i32) {
    %c0_i32 = arith.constant 0 : i32
    return %arg0, %arg2 : i32, i32
  }
  func.func @transform_1(%arg0: i32, %arg1: i32, %arg2: i32) -> (i32, i32) {
    %c0_i32 = arith.constant 0 : i32
    return %arg2, %arg1 : i32, i32
  }
  func.func @transform_2(%arg0: i32, %arg1: i32, %arg2: i32) -> (i32, i32) {
    %c0_i32 = arith.constant 0 : i32
    %c0_i32_0 = arith.constant 0 : i32
    return %c0_i32, %arg1 : i32, i32
  }
  func.func @transform_3(%arg0: i32, %arg1: i32, %arg2: i32) -> (i32, i32) {
    %c0_i32 = arith.constant 0 : i32
    return %arg0, %arg1 : i32, i32
  }
}

module attributes {stable_mosaic.version = 11 : i64} {
  func.func @_attn_kernel(%arg0: i32, %arg1: i32, %arg2: memref<1x8x32xbf16, #tpu.memory_space<vmem>>, %arg3: memref<1x8x32xbf16, #tpu.memory_space<vmem>>, %arg4: memref<1x8x32xbf16, #tpu.memory_space<vmem>>, %arg5: memref<1x8x8xf32, #tpu.memory_space<vmem>>, %arg6: memref<1x8x32xbf16, #tpu.memory_space<vmem>>) attributes {dimension_semantics = [#tpu.dimension_semantics<parallel>, #tpu.dimension_semantics<parallel>], iteration_bounds = array<i64: 2, 1>, scalar_prefetch = 0 : i64, scratch_operands = 0 : i64, tpu.core_type = #tpu.core_type<tc>, window_params = [{transform_indices = @transform_0, window_bounds = array<i64: 1, 8, 32>}, {transform_indices = @transform_1, window_bounds = array<i64: 1, 8, 32>}, {transform_indices = @transform_2, window_bounds = array<i64: 1, 8, 32>}, {transform_indices = @transform_3, window_bounds = array<i64: 1, 8, 8>}, {transform_indices = @transform_4, window_bounds = array<i64: 1, 8, 32>}]} {
    %c0 = arith.constant 0 : index
    %c0_0 = arith.constant 0 : index
    %c0_1 = arith.constant 0 : index
    %0 = vector.load %arg5[%c0, %c0_0, %c0_1] : memref<1x8x8xf32, #tpu.memory_space<vmem>>, vector<1x8x8xf32>
    %1 = vector.shape_cast %0 : vector<1x8x8xf32> to vector<8x8xf32>
    %c0_2 = arith.constant 0 : index
    %c0_3 = arith.constant 0 : index
    %c0_4 = arith.constant 0 : index
    %2 = vector.load %arg2[%c0_2, %c0_3, %c0_4] : memref<1x8x32xbf16, #tpu.memory_space<vmem>>, vector<1x8x8xbf16>
    %3 = vector.shape_cast %2 : vector<1x8x8xbf16> to vector<8x8xbf16>
    %c0_5 = arith.constant 0 : index
    %c0_6 = arith.constant 0 : index
    %c0_7 = arith.constant 0 : index
    %4 = vector.load %arg3[%c0_5, %c0_6, %c0_7] : memref<1x8x32xbf16, #tpu.memory_space<vmem>>, vector<1x8x8xbf16>
    %5 = vector.shape_cast %4 : vector<1x8x8xbf16> to vector<8x8xbf16>
    %c0_8 = arith.constant 0 : index
    %c0_9 = arith.constant 0 : index
    %c0_10 = arith.constant 0 : index
    %6 = vector.load %arg4[%c0_8, %c0_9, %c0_10] : memref<1x8x32xbf16, #tpu.memory_space<vmem>>, vector<1x8x8xbf16>
    %7 = vector.shape_cast %6 : vector<1x8x8xbf16> to vector<8x8xbf16>
    %cst = arith.constant dense<0.000000e+00> : vector<8x8xf32>
    %8 = tpu.matmul %3, %5, %cst {dimension_numbers = #tpu.dot_dimension_numbers<[1], [1], [0], [0], [0, 0, 1, 0], [], []>} : vector<8x8xbf16>, vector<8x8xbf16>, vector<8x8xf32> -> vector<8x8xf32>
    %cst_11 = arith.constant 0.353553385 : f32
    %9 = vector.broadcast %cst_11 : f32 to vector<8x8xf32>
    %10 = arith.mulf %8, %9 : vector<8x8xf32>
    %11 = arith.addf %10, %1 : vector<8x8xf32>
    %cst_12 = arith.constant -3.40282347E+38 : f32
    %12 = vector.broadcast %cst_12 : f32 to vector<8x8xf32>
    %13 = arith.maximumf %11, %12 : vector<8x8xf32>
    %cst_13 = arith.constant dense<0xFF800000> : vector<8xf32>
    %14 = vector.multi_reduction <maximumf>, %13, %cst_13 [1] : vector<8x8xf32> to vector<8xf32>
    %15 = vector.shape_cast %14 : vector<8xf32> to vector<8x1xf32>
    %16 = vector.broadcast %15 : vector<8x1xf32> to vector<8x8xf32>
    %17 = arith.subf %13, %16 : vector<8x8xf32>
    %18 = math.exp %17 : vector<8x8xf32>
    %cst_14 = arith.constant dense<0.000000e+00> : vector<8xf32>
    %19 = vector.multi_reduction <add>, %18, %cst_14 [1] : vector<8x8xf32> to vector<8xf32>
    %20 = vector.shape_cast %19 : vector<8xf32> to vector<8x1xf32>
    %21 = tpu.reciprocal %20 {approx = true} : vector<8x1xf32> -> vector<8x1xf32>
    %22 = vector.broadcast %21 : vector<8x1xf32> to vector<8x8xf32>
    %23 = arith.mulf %18, %22 : vector<8x8xf32>
    %24 = arith.truncf %23 : vector<8x8xf32> to vector<8x8xbf16>
    %cst_15 = arith.constant dense<0.000000e+00> : vector<8x8xf32>
    %25 = tpu.matmul %24, %7, %cst_15 {dimension_numbers = #tpu.dot_dimension_numbers<[1], [0], [0], [1], [0, 0, 1, 1], [], []>} : vector<8x8xbf16>, vector<8x8xbf16>, vector<8x8xf32> -> vector<8x8xf32>
    %c0_16 = arith.constant 0 : index
    %c0_17 = arith.constant 0 : index
    %c8 = arith.constant 8 : index
    %26 = vector.load %arg2[%c0_16, %c0_17, %c8] : memref<1x8x32xbf16, #tpu.memory_space<vmem>>, vector<1x8x8xbf16>
    %27 = vector.shape_cast %26 : vector<1x8x8xbf16> to vector<8x8xbf16>
    %c0_18 = arith.constant 0 : index
    %c0_19 = arith.constant 0 : index
    %c8_20 = arith.constant 8 : index
    %28 = vector.load %arg3[%c0_18, %c0_19, %c8_20] : memref<1x8x32xbf16, #tpu.memory_space<vmem>>, vector<1x8x8xbf16>
    %29 = vector.shape_cast %28 : vector<1x8x8xbf16> to vector<8x8xbf16>
    %c0_21 = arith.constant 0 : index
    %c0_22 = arith.constant 0 : index
    %c8_23 = arith.constant 8 : index
    %30 = vector.load %arg4[%c0_21, %c0_22, %c8_23] : memref<1x8x32xbf16, #tpu.memory_space<vmem>>, vector<1x8x8xbf16>
    %31 = vector.shape_cast %30 : vector<1x8x8xbf16> to vector<8x8xbf16>
    %cst_24 = arith.constant dense<0.000000e+00> : vector<8x8xf32>
    %32 = tpu.matmul %27, %29, %cst_24 {dimension_numbers = #tpu.dot_dimension_numbers<[1], [1], [0], [0], [0, 0, 1, 0], [], []>} : vector<8x8xbf16>, vector<8x8xbf16>, vector<8x8xf32> -> vector<8x8xf32>
    %cst_25 = arith.constant 0.353553385 : f32
    %33 = vector.broadcast %cst_25 : f32 to vector<8x8xf32>
    %34 = arith.mulf %32, %33 : vector<8x8xf32>
    %35 = arith.addf %34, %1 : vector<8x8xf32>
    %cst_26 = arith.constant -3.40282347E+38 : f32
    %36 = vector.broadcast %cst_26 : f32 to vector<8x8xf32>
    %37 = arith.maximumf %35, %36 : vector<8x8xf32>
    %cst_27 = arith.constant dense<0xFF800000> : vector<8xf32>
    %38 = vector.multi_reduction <maximumf>, %37, %cst_27 [1] : vector<8x8xf32> to vector<8xf32>
    %39 = vector.shape_cast %38 : vector<8xf32> to vector<8x1xf32>
    %40 = vector.broadcast %39 : vector<8x1xf32> to vector<8x8xf32>
    %41 = arith.subf %37, %40 : vector<8x8xf32>
    %42 = math.exp %41 : vector<8x8xf32>
    %cst_28 = arith.constant dense<0.000000e+00> : vector<8xf32>
    %43 = vector.multi_reduction <add>, %42, %cst_28 [1] : vector<8x8xf32> to vector<8xf32>
    %44 = vector.shape_cast %43 : vector<8xf32> to vector<8x1xf32>
    %45 = tpu.reciprocal %44 {approx = true} : vector<8x1xf32> -> vector<8x1xf32>
    %46 = vector.broadcast %45 : vector<8x1xf32> to vector<8x8xf32>
    %47 = arith.mulf %42, %46 : vector<8x8xf32>
    %48 = arith.truncf %47 : vector<8x8xf32> to vector<8x8xbf16>
    %cst_29 = arith.constant dense<0.000000e+00> : vector<8x8xf32>
    %49 = tpu.matmul %48, %31, %cst_29 {dimension_numbers = #tpu.dot_dimension_numbers<[1], [0], [0], [1], [0, 0, 1, 1], [], []>} : vector<8x8xbf16>, vector<8x8xbf16>, vector<8x8xf32> -> vector<8x8xf32>
    %c0_30 = arith.constant 0 : index
    %c0_31 = arith.constant 0 : index
    %c16 = arith.constant 16 : index
    %50 = vector.load %arg2[%c0_30, %c0_31, %c16] : memref<1x8x32xbf16, #tpu.memory_space<vmem>>, vector<1x8x8xbf16>
    %51 = vector.shape_cast %50 : vector<1x8x8xbf16> to vector<8x8xbf16>
    %c0_32 = arith.constant 0 : index
    %c0_33 = arith.constant 0 : index
    %c16_34 = arith.constant 16 : index
    %52 = vector.load %arg3[%c0_32, %c0_33, %c16_34] : memref<1x8x32xbf16, #tpu.memory_space<vmem>>, vector<1x8x8xbf16>
    %53 = vector.shape_cast %52 : vector<1x8x8xbf16> to vector<8x8xbf16>
    %c0_35 = arith.constant 0 : index
    %c0_36 = arith.constant 0 : index
    %c16_37 = arith.constant 16 : index
    %54 = vector.load %arg4[%c0_35, %c0_36, %c16_37] : memref<1x8x32xbf16, #tpu.memory_space<vmem>>, vector<1x8x8xbf16>
    %55 = vector.shape_cast %54 : vector<1x8x8xbf16> to vector<8x8xbf16>
    %cst_38 = arith.constant dense<0.000000e+00> : vector<8x8xf32>
    %56 = tpu.matmul %51, %53, %cst_38 {dimension_numbers = #tpu.dot_dimension_numbers<[1], [1], [0], [0], [0, 0, 1, 0], [], []>} : vector<8x8xbf16>, vector<8x8xbf16>, vector<8x8xf32> -> vector<8x8xf32>
    %cst_39 = arith.constant 0.353553385 : f32
    %57 = vector.broadcast %cst_39 : f32 to vector<8x8xf32>
    %58 = arith.mulf %56, %57 : vector<8x8xf32>
    %59 = arith.addf %58, %1 : vector<8x8xf32>
    %cst_40 = arith.constant -3.40282347E+38 : f32
    %60 = vector.broadcast %cst_40 : f32 to vector<8x8xf32>
    %61 = arith.maximumf %59, %60 : vector<8x8xf32>
    %cst_41 = arith.constant dense<0xFF800000> : vector<8xf32>
    %62 = vector.multi_reduction <maximumf>, %61, %cst_41 [1] : vector<8x8xf32> to vector<8xf32>
    %63 = vector.shape_cast %62 : vector<8xf32> to vector<8x1xf32>
    %64 = vector.broadcast %63 : vector<8x1xf32> to vector<8x8xf32>
    %65 = arith.subf %61, %64 : vector<8x8xf32>
    %66 = math.exp %65 : vector<8x8xf32>
    %cst_42 = arith.constant dense<0.000000e+00> : vector<8xf32>
    %67 = vector.multi_reduction <add>, %66, %cst_42 [1] : vector<8x8xf32> to vector<8xf32>
    %68 = vector.shape_cast %67 : vector<8xf32> to vector<8x1xf32>
    %69 = tpu.reciprocal %68 {approx = true} : vector<8x1xf32> -> vector<8x1xf32>
    %70 = vector.broadcast %69 : vector<8x1xf32> to vector<8x8xf32>
    %71 = arith.mulf %66, %70 : vector<8x8xf32>
    %72 = arith.truncf %71 : vector<8x8xf32> to vector<8x8xbf16>
    %cst_43 = arith.constant dense<0.000000e+00> : vector<8x8xf32>
    %73 = tpu.matmul %72, %55, %cst_43 {dimension_numbers = #tpu.dot_dimension_numbers<[1], [0], [0], [1], [0, 0, 1, 1], [], []>} : vector<8x8xbf16>, vector<8x8xbf16>, vector<8x8xf32> -> vector<8x8xf32>
    %c0_44 = arith.constant 0 : index
    %c0_45 = arith.constant 0 : index
    %c24 = arith.constant 24 : index
    %74 = vector.load %arg2[%c0_44, %c0_45, %c24] : memref<1x8x32xbf16, #tpu.memory_space<vmem>>, vector<1x8x8xbf16>
    %75 = vector.shape_cast %74 : vector<1x8x8xbf16> to vector<8x8xbf16>
    %c0_46 = arith.constant 0 : index
    %c0_47 = arith.constant 0 : index
    %c24_48 = arith.constant 24 : index
    %76 = vector.load %arg3[%c0_46, %c0_47, %c24_48] : memref<1x8x32xbf16, #tpu.memory_space<vmem>>, vector<1x8x8xbf16>
    %77 = vector.shape_cast %76 : vector<1x8x8xbf16> to vector<8x8xbf16>
    %c0_49 = arith.constant 0 : index
    %c0_50 = arith.constant 0 : index
    %c24_51 = arith.constant 24 : index
    %78 = vector.load %arg4[%c0_49, %c0_50, %c24_51] : memref<1x8x32xbf16, #tpu.memory_space<vmem>>, vector<1x8x8xbf16>
    %79 = vector.shape_cast %78 : vector<1x8x8xbf16> to vector<8x8xbf16>
    %cst_52 = arith.constant dense<0.000000e+00> : vector<8x8xf32>
    %80 = tpu.matmul %75, %77, %cst_52 {dimension_numbers = #tpu.dot_dimension_numbers<[1], [1], [0], [0], [0, 0, 1, 0], [], []>} : vector<8x8xbf16>, vector<8x8xbf16>, vector<8x8xf32> -> vector<8x8xf32>
    %cst_53 = arith.constant 0.353553385 : f32
    %81 = vector.broadcast %cst_53 : f32 to vector<8x8xf32>
    %82 = arith.mulf %80, %81 : vector<8x8xf32>
    %83 = arith.addf %82, %1 : vector<8x8xf32>
    %cst_54 = arith.constant -3.40282347E+38 : f32
    %84 = vector.broadcast %cst_54 : f32 to vector<8x8xf32>
    %85 = arith.maximumf %83, %84 : vector<8x8xf32>
    %cst_55 = arith.constant dense<0xFF800000> : vector<8xf32>
    %86 = vector.multi_reduction <maximumf>, %85, %cst_55 [1] : vector<8x8xf32> to vector<8xf32>
    %87 = vector.shape_cast %86 : vector<8xf32> to vector<8x1xf32>
    %88 = vector.broadcast %87 : vector<8x1xf32> to vector<8x8xf32>
    %89 = arith.subf %85, %88 : vector<8x8xf32>
    %90 = math.exp %89 : vector<8x8xf32>
    %cst_56 = arith.constant dense<0.000000e+00> : vector<8xf32>
    %91 = vector.multi_reduction <add>, %90, %cst_56 [1] : vector<8x8xf32> to vector<8xf32>
    %92 = vector.shape_cast %91 : vector<8xf32> to vector<8x1xf32>
    %93 = tpu.reciprocal %92 {approx = true} : vector<8x1xf32> -> vector<8x1xf32>
    %94 = vector.broadcast %93 : vector<8x1xf32> to vector<8x8xf32>
    %95 = arith.mulf %90, %94 : vector<8x8xf32>
    %96 = arith.truncf %95 : vector<8x8xf32> to vector<8x8xbf16>
    %cst_57 = arith.constant dense<0.000000e+00> : vector<8x8xf32>
    %97 = tpu.matmul %96, %79, %cst_57 {dimension_numbers = #tpu.dot_dimension_numbers<[1], [0], [0], [1], [0, 0, 1, 1], [], []>} : vector<8x8xbf16>, vector<8x8xbf16>, vector<8x8xf32> -> vector<8x8xf32>
    %98 = tpu.concatenate %25, %49, %73, %97 in 1 : vector<8x8xf32>, vector<8x8xf32>, vector<8x8xf32>, vector<8x8xf32> -> vector<8x32xf32>
    %99 = arith.truncf %98 : vector<8x32xf32> to vector<8x32xbf16>
    %c0_58 = arith.constant 0 : index
    %c0_59 = arith.constant 0 : index
    %c0_60 = arith.constant 0 : index
    %100 = vector.load %arg6[%c0_58, %c0_59, %c0_60] : memref<1x8x32xbf16, #tpu.memory_space<vmem>>, vector<1x8x32xbf16>
    %101 = vector.shape_cast %100 : vector<1x8x32xbf16> to vector<8x32xbf16>
    %102 = vector.shape_cast %99 : vector<8x32xbf16> to vector<1x8x32xbf16>
    tpu.vector_store %arg6[%c0_58, %c0_59, %c0_60], %102 {strides = array<i32>} : memref<1x8x32xbf16, #tpu.memory_space<vmem>>, vector<1x8x32xbf16>,
    return
  }
  func.func @transform_0(%arg0: i32, %arg1: i32) -> (i32, i32, i32) {
    %c0_i32 = arith.constant 0 : i32
    %c0_i32_0 = arith.constant 0 : i32
    return %arg0, %c0_i32, %arg1 : i32, i32, i32
  }
  func.func @transform_1(%arg0: i32, %arg1: i32) -> (i32, i32, i32) {
    %c0_i32 = arith.constant 0 : i32
    %c0_i32_0 = arith.constant 0 : i32
    return %arg0, %c0_i32, %arg1 : i32, i32, i32
  }
  func.func @transform_2(%arg0: i32, %arg1: i32) -> (i32, i32, i32) {
    %c0_i32 = arith.constant 0 : i32
    %c0_i32_0 = arith.constant 0 : i32
    return %arg0, %c0_i32, %arg1 : i32, i32, i32
  }
  func.func @transform_3(%arg0: i32, %arg1: i32) -> (i32, i32, i32) {
    %c0_i32 = arith.constant 0 : i32
    %c0_i32_0 = arith.constant 0 : i32
    %c0_i32_1 = arith.constant 0 : i32
    return %arg0, %c0_i32, %c0_i32_0 : i32, i32, i32
  }
  func.func @transform_4(%arg0: i32, %arg1: i32) -> (i32, i32, i32) {
    %c0_i32 = arith.constant 0 : i32
    %c0_i32_0 = arith.constant 0 : i32
    return %arg0, %c0_i32, %arg1 : i32, i32, i32
  }
}

module attributes {stable_mosaic.version = 11 : i64} {
  func.func @_mm_kernel(%arg0: i32, %arg1: i32, %arg2: i32, %arg3: memref<8x32xbf16, #tpu.memory_space<vmem>>, %arg4: memref<32x64xbf16, #tpu.memory_space<vmem>>, %arg5: memref<1x64xf32, #tpu.memory_space<vmem>>, %arg6: memref<8x64xbf16, #tpu.memory_space<vmem>>, %arg7: memref<8x64xf32, #tpu.memory_space<vmem>>) attributes {dimension_semantics = [#tpu.dimension_semantics<parallel>, #tpu.dimension_semantics<parallel>, #tpu.dimension_semantics<arbitrary>], iteration_bounds = array<i64: 2, 1, 1>, scalar_prefetch = 0 : i64, scratch_operands = 1 : i64, tpu.core_type = #tpu.core_type<tc>, window_params = [{transform_indices = @transform_0, window_bounds = array<i64: 8, 32>}, {transform_indices = @transform_1, window_bounds = array<i64: 32, 64>}, {transform_indices = @transform_2, window_bounds = array<i64: 1, 64>}, {transform_indices = @transform_3, window_bounds = array<i64: 8, 64>}]} {
    %c0_i32 = arith.constant 0 : i32
    %0 = arith.cmpi eq, %arg2, %c0_i32 : i32
    %1 = arith.extui %0 : i1 to i32
    %c0_i32_0 = arith.constant 0 : i32
    %2 = arith.cmpi ne, %1, %c0_i32_0 : i32
    scf.if %2 {
      %cst_10 = arith.constant 0.000000e+00 : f32
      %12 = vector.broadcast %cst_10 : f32 to vector<8x64xf32>
      %c0_11 = arith.constant 0 : index
      %c0_12 = arith.constant 0 : index
      %13 = vector.load %arg7[%c0_11, %c0_12] : memref<8x64xf32, #tpu.memory_space<vmem>>, vector<8x64xf32>
      tpu.vector_store %arg7[%c0_11, %c0_12], %12 {strides = array<i32>} : memref<8x64xf32, #tpu.memory_space<vmem>>, vector<8x64xf32>,
    } else {
    }
    %c0 = arith.constant 0 : index
    %c0_1 = arith.constant 0 : index
    %3 = vector.load %arg7[%c0, %c0_1] : memref<8x64xf32, #tpu.memory_space<vmem>>, vector<8x64xf32>
    %c0_2 = arith.constant 0 : index
    %c0_3 = arith.constant 0 : index
    %4 = vector.load %arg3[%c0_2, %c0_3] : memref<8x32xbf16, #tpu.memory_space<vmem>>, vector<8x32xbf16>
    %c0_4 = arith.constant 0 : index
    %c0_5 = arith.constant 0 : index
    %5 = vector.load %arg4[%c0_4, %c0_5] : memref<32x64xbf16, #tpu.memory_space<vmem>>, vector<32x64xbf16>
    %cst = arith.constant dense<0.000000e+00> : vector<8x64xf32>
    %6 = tpu.matmul %4, %5, %cst {dimension_numbers = #tpu.dot_dimension_numbers<[1], [0], [0], [1], [0, 0, 1, 1], [], []>} : vector<8x32xbf16>, vector<32x64xbf16>, vector<8x64xf32> -> vector<8x64xf32>
    %7 = arith.addf %3, %6 : vector<8x64xf32>
    %c0_6 = arith.constant 0 : index
    %c0_7 = arith.constant 0 : index
    %8 = vector.load %arg7[%c0_6, %c0_7] : memref<8x64xf32, #tpu.memory_space<vmem>>, vector<8x64xf32>
    tpu.vector_store %arg7[%c0_6, %c0_7], %7 {strides = array<i32>} : memref<8x64xf32, #tpu.memory_space<vmem>>, vector<8x64xf32>,
    %c0_i32_8 = arith.constant 0 : i32
    %9 = arith.cmpi eq, %arg2, %c0_i32_8 : i32
    %10 = arith.extui %9 : i1 to i32
    %c0_i32_9 = arith.constant 0 : i32
    %11 = arith.cmpi ne, %10, %c0_i32_9 : i32
    scf.if %11 {
      %c0_10 = arith.constant 0 : index
      %c0_11 = arith.constant 0 : index
      %12 = vector.load %arg7[%c0_10, %c0_11] : memref<8x64xf32, #tpu.memory_space<vmem>>, vector<8x64xf32>
      %c0_12 = arith.constant 0 : index
      %c0_13 = arith.constant 0 : index
      %13 = vector.load %arg5[%c0_12, %c0_13] : memref<1x64xf32, #tpu.memory_space<vmem>>, vector<1x64xf32>
      %14 = vector.broadcast %13 : vector<1x64xf32> to vector<8x64xf32>
      %15 = arith.addf %12, %14 : vector<8x64xf32>
      %16 = arith.truncf %15 : vector<8x64xf32> to vector<8x64xbf16>
      %c0_14 = arith.constant 0 : index
      %c0_15 = arith.constant 0 : index
      %17 = vector.load %arg6[%c0_14, %c0_15] : memref<8x64xbf16, #tpu.memory_space<vmem>>, vector<8x64xbf16>
      tpu.vector_store %arg6[%c0_14, %c0_15], %16 {strides = array<i32>} : memref<8x64xbf16, #tpu.memory_space<vmem>>, vector<8x64xbf16>,
    } else {
    }
    return
  }
  func.func @transform_0(%arg0: i32, %arg1: i32, %arg2: i32) -> (i32, i32) {
    %c0_i32 = arith.constant 0 : i32
    return %arg0, %arg2 : i32, i32
  }
  func.func @transform_1(%arg0: i32, %arg1: i32, %arg2: i32) -> (i32, i32) {
    %c0_i32 = arith.constant 0 : i32
    return %arg2, %arg1 : i32, i32
  }
  func.func @transform_2(%arg0: i32, %arg1: i32, %arg2: i32) -> (i32, i32) {
    %c0_i32 = arith.constant 0 : i32
    %c0_i32_0 = arith.constant 0 : i32
    return %c0_i32, %arg1 : i32, i32
  }
  func.func @transform_3(%arg0: i32, %arg1: i32, %arg2: i32) -> (i32, i32) {
    %c0_i32 = arith.constant 0 : i32
    return %arg0, %arg1 : i32, i32
  }
}

module attributes {stable_mosaic.version = 11 : i64} {
  func.func @_mm_ln_kernel(%arg0: i32, %arg1: i32, %arg2: memref<8x64xbf16, #tpu.memory_space<vmem>>, %arg3: memref<64x32xbf16, #tpu.memory_space<vmem>>, %arg4: memref<1x32xf32, #tpu.memory_space<vmem>>, %arg5: memref<1x32xf32, #tpu.memory_space<vmem>>, %arg6: memref<1x32xf32, #tpu.memory_space<vmem>>, %arg7: memref<8x32xbf16, #tpu.memory_space<vmem>>, %arg8: memref<8x32xbf16, #tpu.memory_space<vmem>>, %arg9: memref<8x32xf32, #tpu.memory_space<vmem>>) attributes {dimension_semantics = [#tpu.dimension_semantics<parallel>, #tpu.dimension_semantics<arbitrary>], iteration_bounds = array<i64: 2, 1>, scalar_prefetch = 0 : i64, scratch_operands = 1 : i64, tpu.core_type = #tpu.core_type<tc>, window_params = [{transform_indices = @transform_0, window_bounds = array<i64: 8, 64>}, {transform_indices = @transform_1, window_bounds = array<i64: 64, 32>}, {pipeline_mode = #tpu.pipeline_mode<synchronous>, transform_indices = @transform_2, window_bounds = array<i64: 1, 32>}, {pipeline_mode = #tpu.pipeline_mode<synchronous>, transform_indices = @transform_3, window_bounds = array<i64: 1, 32>}, {pipeline_mode = #tpu.pipeline_mode<synchronous>, transform_indices = @transform_4, window_bounds = array<i64: 1, 32>}, {transform_indices = @transform_5, window_bounds = array<i64: 8, 32>}, {transform_indices = @transform_6, window_bounds = array<i64: 8, 32>}]} {
    %c0_i32 = arith.constant 0 : i32
    %0 = arith.cmpi eq, %arg1, %c0_i32 : i32
    %1 = arith.extui %0 : i1 to i32
    %c0_i32_0 = arith.constant 0 : i32
    %2 = arith.cmpi ne, %1, %c0_i32_0 : i32
    scf.if %2 {
      %cst_10 = arith.constant 0.000000e+00 : f32
      %12 = vector.broadcast %cst_10 : f32 to vector<8x32xf32>
      %c0_11 = arith.constant 0 : index
      %c0_12 = arith.constant 0 : index
      %13 = vector.load %arg9[%c0_11, %c0_12] : memref<8x32xf32, #tpu.memory_space<vmem>>, vector<8x32xf32>
      tpu.vector_store %arg9[%c0_11, %c0_12], %12 {strides = array<i32>} : memref<8x32xf32, #tpu.memory_space<vmem>>, vector<8x32xf32>,
    } else {
    }
    %c0 = arith.constant 0 : index
    %c0_1 = arith.constant 0 : index
    %3 = vector.load %arg9[%c0, %c0_1] : memref<8x32xf32, #tpu.memory_space<vmem>>, vector<8x32xf32>
    %c0_2 = arith.constant 0 : index
    %c0_3 = arith.constant 0 : index
    %4 = vector.load %arg2[%c0_2, %c0_3] : memref<8x64xbf16, #tpu.memory_space<vmem>>, vector<8x64xbf16>
    %c0_4 = arith.constant 0 : index
    %c0_5 = arith.constant 0 : index
    %5 = vector.load %arg3[%c0_4, %c0_5] : memref<64x32xbf16, #tpu.memory_space<vmem>>, vector<64x32xbf16>
    %cst = arith.constant dense<0.000000e+00> : vector<8x32xf32>
    %6 = tpu.matmul %4, %5, %cst {dimension_numbers = #tpu.dot_dimension_numbers<[1], [0], [0], [1], [0, 0, 1, 1], [], []>} : vector<8x64xbf16>, vector<64x32xbf16>, vector<8x32xf32> -> vector<8x32xf32>
    %7 = arith.addf %3, %6 : vector<8x32xf32>
    %c0_6 = arith.constant 0 : index
    %c0_7 = arith.constant 0 : index
    %8 = vector.load %arg9[%c0_6, %c0_7] : memref<8x32xf32, #tpu.memory_space<vmem>>, vector<8x32xf32>
    tpu.vector_store %arg9[%c0_6, %c0_7], %7 {strides = array<i32>} : memref<8x32xf32, #tpu.memory_space<vmem>>, vector<8x32xf32>,
    %c0_i32_8 = arith.constant 0 : i32
    %9 = arith.cmpi eq, %arg1, %c0_i32_8 : i32
    %10 = arith.extui %9 : i1 to i32
    %c0_i32_9 = arith.constant 0 : i32
    %11 = arith.cmpi ne, %10, %c0_i32_9 : i32
    scf.if %11 {
      %c0_10 = arith.constant 0 : index
      %c0_11 = arith.constant 0 : index
      %12 = vector.load %arg9[%c0_10, %c0_11] : memref<8x32xf32, #tpu.memory_space<vmem>>, vector<8x32xf32>
      %c0_12 = arith.constant 0 : index
      %c0_13 = arith.constant 0 : index
      %13 = vector.load %arg4[%c0_12, %c0_13] : memref<1x32xf32, #tpu.memory_space<vmem>>, vector<1x32xf32>
      %14 = vector.broadcast %13 : vector<1x32xf32> to vector<8x32xf32>
      %15 = arith.addf %12, %14 : vector<8x32xf32>
      %c0_14 = arith.constant 0 : index
      %c0_15 = arith.constant 0 : index
      %16 = vector.load %arg7[%c0_14, %c0_15] : memref<8x32xbf16, #tpu.memory_space<vmem>>, vector<8x32xbf16>
      %17 = arith.extf %16 : vector<8x32xbf16> to vector<8x32xf32>
      %18 = arith.addf %15, %17 : vector<8x32xf32>
      %cst_16 = arith.constant dense<0.000000e+00> : vector<8xf32>
      %19 = vector.multi_reduction <add>, %18, %cst_16 [1] : vector<8x32xf32> to vector<8xf32>
      %20 = vector.shape_cast %19 : vector<8xf32> to vector<8x1xf32>
      %cst_17 = arith.constant 3.200000e+01 : f32
      %21 = vector.broadcast %cst_17 : f32 to vector<8x1xf32>
      %22 = arith.divf %20, %21 : vector<8x1xf32>
      %23 = vector.broadcast %22 : vector<8x1xf32> to vector<8x32xf32>
      %24 = arith.subf %18, %23 : vector<8x32xf32>
      %25 = arith.mulf %24, %24 : vector<8x32xf32>
      %cst_18 = arith.constant dense<0.000000e+00> : vector<8xf32>
      %26 = vector.multi_reduction <add>, %25, %cst_18 [1] : vector<8x32xf32> to vector<8xf32>
      %27 = vector.shape_cast %26 : vector<8xf32> to vector<8x1xf32>
      %cst_19 = arith.constant 3.200000e+01 : f32
      %28 = vector.broadcast %cst_19 : f32 to vector<8x1xf32>
      %29 = arith.divf %27, %28 : vector<8x1xf32>
      %30 = vector.broadcast %22 : vector<8x1xf32> to vector<8x32xf32>
      %31 = arith.subf %18, %30 : vector<8x32xf32>
      %cst_20 = arith.constant 9.99999996E-13 : f32
      %32 = vector.broadcast %cst_20 : f32 to vector<8x1xf32>
      %33 = arith.addf %29, %32 : vector<8x1xf32>
      %34 = math.rsqrt %33 : vector<8x1xf32>
      %35 = vector.broadcast %34 : vector<8x1xf32> to vector<8x32xf32>
      %36 = arith.mulf %31, %35 : vector<8x32xf32>
      %c0_21 = arith.constant 0 : index
      %c0_22 = arith.constant 0 : index
      %37 = vector.load %arg5[%c0_21, %c0_22] : memref<1x32xf32, #tpu.memory_space<vmem>>, vector<1x32xf32>
      %38 = vector.broadcast %37 : vector<1x32xf32> to vector<8x32xf32>
      %39 = arith.mulf %36, %38 : vector<8x32xf32>
      %c0_23 = arith.constant 0 : index
      %c0_24 = arith.constant 0 : index
      %40 = vector.load %arg6[%c0_23, %c0_24] : memref<1x32xf32, #tpu.memory_space<vmem>>, vector<1x32xf32>
      %41 = vector.broadcast %40 : vector<1x32xf32> to vector<8x32xf32>
      %42 = arith.addf %39, %41 : vector<8x32xf32>
      %43 = arith.truncf %42 : vector<8x32xf32> to vector<8x32xbf16>
      %c0_25 = arith.constant 0 : index
      %c0_26 = arith.constant 0 : index
      %44 = vector.load %arg8[%c0_25, %c0_26] : memref<8x32xbf16, #tpu.memory_space<vmem>>, vector<8x32xbf16>
      tpu.vector_store %arg8[%c0_25, %c0_26], %43 {strides = array<i32>} : memref<8x32xbf16, #tpu.memory_space<vmem>>, vector<8x32xbf16>,
    } else {
    }
    return
  }
  func.func @transform_0(%arg0: i32, %arg1: i32) -> (i32, i32) {
    %c0_i32 = arith.constant 0 : i32
    return %arg0, %arg1 : i32, i32
  }
  func.func @transform_1(%arg0: i32, %arg1: i32) -> (i32, i32) {
    %c0_i32 = arith.constant 0 : i32
    %c0_i32_0 = arith.constant 0 : i32
    return %arg1, %c0_i32 : i32, i32
  }
  func.func @transform_2(%arg0: i32, %arg1: i32) -> (i32, i32) {
    %c0_i32 = arith.constant 0 : i32
    %c0_i32_0 = arith.constant 0 : i32
    %c0_i32_1 = arith.constant 0 : i32
    return %c0_i32, %c0_i32_0 : i32, i32
  }
  func.func @transform_3(%arg0: i32, %arg1: i32) -> (i32, i32) {
    %c0_i32 = arith.constant 0 : i32
    %c0_i32_0 = arith.constant 0 : i32
    %c0_i32_1 = arith.constant 0 : i32
    return %c0_i32, %c0_i32_0 : i32, i32
  }
  func.func @transform_4(%arg0: i32, %arg1: i32) -> (i32, i32) {
    %c0_i32 = arith.constant 0 : i32
    %c0_i32_0 = arith.constant 0 : i32
    %c0_i32_1 = arith.constant 0 : i32
    return %c0_i32, %c0_i32_0 : i32, i32
  }
  func.func @transform_5(%arg0: i32, %arg1: i32) -> (i32, i32) {
    %c0_i32 = arith.constant 0 : i32
    %c0_i32_0 = arith.constant 0 : i32
    return %arg0, %c0_i32 : i32, i32
  }
  func.func @transform_6(%arg0: i32, %arg1: i32) -> (i32, i32) {
    %c0_i32 = arith.constant 0 : i32
    %c0_i32_0 = arith.constant 0 : i32
    return %arg0, %c0_i32 : i32, i32
  }
}

module attributes {stable_mosaic.version = 11 : i64} {
  func.func @_mm_kernel(%arg0: i32, %arg1: i32, %arg2: i32, %arg3: memref<8x32xbf16, #tpu.memory_space<vmem>>, %arg4: memref<32x32xbf16, #tpu.memory_space<vmem>>, %arg5: memref<1x32xf32, #tpu.memory_space<vmem>>, %arg6: memref<8x32xbf16, #tpu.memory_space<vmem>>, %arg7: memref<8x32xf32, #tpu.memory_space<vmem>>) attributes {dimension_semantics = [#tpu.dimension_semantics<parallel>, #tpu.dimension_semantics<parallel>, #tpu.dimension_semantics<arbitrary>], iteration_bounds = array<i64: 2, 1, 1>, scalar_prefetch = 0 : i64, scratch_operands = 1 : i64, tpu.core_type = #tpu.core_type<tc>, window_params = [{transform_indices = @transform_0, window_bounds = array<i64: 8, 32>}, {transform_indices = @transform_1, window_bounds = array<i64: 32, 32>}, {transform_indices = @transform_2, window_bounds = array<i64: 1, 32>}, {transform_indices = @transform_3, window_bounds = array<i64: 8, 32>}]} {
    %c0_i32 = arith.constant 0 : i32
    %0 = arith.cmpi eq, %arg2, %c0_i32 : i32
    %1 = arith.extui %0 : i1 to i32
    %c0_i32_0 = arith.constant 0 : i32
    %2 = arith.cmpi ne, %1, %c0_i32_0 : i32
    scf.if %2 {
      %cst_10 = arith.constant 0.000000e+00 : f32
      %12 = vector.broadcast %cst_10 : f32 to vector<8x32xf32>
      %c0_11 = arith.constant 0 : index
      %c0_12 = arith.constant 0 : index
      %13 = vector.load %arg7[%c0_11, %c0_12] : memref<8x32xf32, #tpu.memory_space<vmem>>, vector<8x32xf32>
      tpu.vector_store %arg7[%c0_11, %c0_12], %12 {strides = array<i32>} : memref<8x32xf32, #tpu.memory_space<vmem>>, vector<8x32xf32>,
    } else {
    }
    %c0 = arith.constant 0 : index
    %c0_1 = arith.constant 0 : index
    %3 = vector.load %arg7[%c0, %c0_1] : memref<8x32xf32, #tpu.memory_space<vmem>>, vector<8x32xf32>
    %c0_2 = arith.constant 0 : index
    %c0_3 = arith.constant 0 : index
    %4 = vector.load %arg3[%c0_2, %c0_3] : memref<8x32xbf16, #tpu.memory_space<vmem>>, vector<8x32xbf16>
    %c0_4 = arith.constant 0 : index
    %c0_5 = arith.constant 0 : index
    %5 = vector.load %arg4[%c0_4, %c0_5] : memref<32x32xbf16, #tpu.memory_space<vmem>>, vector<32x32xbf16>
    %cst = arith.constant dense<0.000000e+00> : vector<8x32xf32>
    %6 = tpu.matmul %4, %5, %cst {dimension_numbers = #tpu.dot_dimension_numbers<[1], [0], [0], [1], [0, 0, 1, 1], [], []>} : vector<8x32xbf16>, vector<32x32xbf16>, vector<8x32xf32> -> vector<8x32xf32>
    %7 = arith.addf %3, %6 : vector<8x32xf32>
    %c0_6 = arith.constant 0 : index
    %c0_7 = arith.constant 0 : index
    %8 = vector.load %arg7[%c0_6, %c0_7] : memref<8x32xf32, #tpu.memory_space<vmem>>, vector<8x32xf32>
    tpu.vector_store %arg7[%c0_6, %c0_7], %7 {strides = array<i32>} : memref<8x32xf32, #tpu.memory_space<vmem>>, vector<8x32xf32>,
    %c0_i32_8 = arith.constant 0 : i32
    %9 = arith.cmpi eq, %arg2, %c0_i32_8 : i32
    %10 = arith.extui %9 : i1 to i32
    %c0_i32_9 = arith.constant 0 : i32
    %11 = arith.cmpi ne, %10, %c0_i32_9 : i32
    scf.if %11 {
      %c0_10 = arith.constant 0 : index
      %c0_11 = arith.constant 0 : index
      %12 = vector.load %arg7[%c0_10, %c0_11] : memref<8x32xf32, #tpu.memory_space<vmem>>, vector<8x32xf32>
      %c0_12 = arith.constant 0 : index
      %c0_13 = arith.constant 0 : index
      %13 = vector.load %arg5[%c0_12, %c0_13] : memref<1x32xf32, #tpu.memory_space<vmem>>, vector<1x32xf32>
      %14 = vector.broadcast %13 : vector<1x32xf32> to vector<8x32xf32>
      %15 = arith.addf %12, %14 : vector<8x32xf32>
      %16 = arith.truncf %15 : vector<8x32xf32> to vector<8x32xbf16>
      %c0_14 = arith.constant 0 : index
      %c0_15 = arith.constant 0 : index
      %17 = vector.load %arg6[%c0_14, %c0_15] : memref<8x32xbf16, #tpu.memory_space<vmem>>, vector<8x32xbf16>
      tpu.vector_store %arg6[%c0_14, %c0_15], %16 {strides = array<i32>} : memref<8x32xbf16, #tpu.memory_space<vmem>>, vector<8x32xbf16>,
    } else {
    }
    return
  }
  func.func @transform_0(%arg0: i32, %arg1: i32, %arg2: i32) -> (i32, i32) {
    %c0_i32 = arith.constant 0 : i32
    return %arg0, %arg2 : i32, i32
  }
  func.func @transform_1(%arg0: i32, %arg1: i32, %arg2: i32) -> (i32, i32) {
    %c0_i32 = arith.constant 0 : i32
    return %arg2, %arg1 : i32, i32
  }
  func.func @transform_2(%arg0: i32, %arg1: i32, %arg2: i32) -> (i32, i32) {
    %c0_i32 = arith.constant 0 : i32
    %c0_i32_0 = arith.constant 0 : i32
    return %c0_i32, %arg1 : i32, i32
  }
  func.func @transform_3(%arg0: i32, %arg1: i32, %arg2: i32) -> (i32, i32) {
    %c0_i32 = arith.constant 0 : i32
    return %arg0, %arg1 : i32, i32
  }
}

module attributes {stable_mosaic.version = 11 : i64} {
  func.func @_mm_ln_kernel(%arg0: i32, %arg1: i32, %arg2: memref<8x32xbf16, #tpu.memory_space<vmem>>, %arg3: memref<32x32xbf16, #tpu.memory_space<vmem>>, %arg4: memref<1x32xf32, #tpu.memory_space<vmem>>, %arg5: memref<1x32xf32, #tpu.memory_space<vmem>>, %arg6: memref<1x32xf32, #tpu.memory_space<vmem>>, %arg7: memref<8x32xbf16, #tpu.memory_space<vmem>>, %arg8: memref<8x32xf32, #tpu.memory_space<vmem>>) attributes {dimension_semantics = [#tpu.dimension_semantics<parallel>, #tpu.dimension_semantics<arbitrary>], iteration_bounds = array<i64: 2, 1>, scalar_prefetch = 0 : i64, scratch_operands = 1 : i64, tpu.core_type = #tpu.core_type<tc>, window_params = [{transform_indices = @transform_0, window_bounds = array<i64: 8, 32>}, {transform_indices = @transform_1, window_bounds = array<i64: 32, 32>}, {pipeline_mode = #tpu.pipeline_mode<synchronous>, transform_indices = @transform_2, window_bounds = array<i64: 1, 32>}, {pipeline_mode = #tpu.pipeline_mode<synchronous>, transform_indices = @transform_3, window_bounds = array<i64: 1, 32>}, {pipeline_mode = #tpu.pipeline_mode<synchronous>, transform_indices = @transform_4, window_bounds = array<i64: 1, 32>}, {transform_indices = @transform_5, window_bounds = array<i64: 8, 32>}]} {
    %c0_i32 = arith.constant 0 : i32
    %0 = arith.cmpi eq, %arg1, %c0_i32 : i32
    %1 = arith.extui %0 : i1 to i32
    %c0_i32_0 = arith.constant 0 : i32
    %2 = arith.cmpi ne, %1, %c0_i32_0 : i32
    scf.if %2 {
      %cst_10 = arith.constant 0.000000e+00 : f32
      %12 = vector.broadcast %cst_10 : f32 to vector<8x32xf32>
      %c0_11 = arith.constant 0 : index
      %c0_12 = arith.constant 0 : index
      %13 = vector.load %arg8[%c0_11, %c0_12] : memref<8x32xf32, #tpu.memory_space<vmem>>, vector<8x32xf32>
      tpu.vector_store %arg8[%c0_11, %c0_12], %12 {strides = array<i32>} : memref<8x32xf32, #tpu.memory_space<vmem>>, vector<8x32xf32>,
    } else {
    }
    %c0 = arith.constant 0 : index
    %c0_1 = arith.constant 0 : index
    %3 = vector.load %arg8[%c0, %c0_1] : memref<8x32xf32, #tpu.memory_space<vmem>>, vector<8x32xf32>
    %c0_2 = arith.constant 0 : index
    %c0_3 = arith.constant 0 : index
    %4 = vector.load %arg2[%c0_2, %c0_3] : memref<8x32xbf16, #tpu.memory_space<vmem>>, vector<8x32xbf16>
    %c0_4 = arith.constant 0 : index
    %c0_5 = arith.constant 0 : index
    %5 = vector.load %arg3[%c0_4, %c0_5] : memref<32x32xbf16, #tpu.memory_space<vmem>>, vector<32x32xbf16>
    %cst = arith.constant dense<0.000000e+00> : vector<8x32xf32>
    %6 = tpu.matmul %4, %5, %cst {dimension_numbers = #tpu.dot_dimension_numbers<[1], [0], [0], [1], [0, 0, 1, 1], [], []>} : vector<8x32xbf16>, vector<32x32xbf16>, vector<8x32xf32> -> vector<8x32xf32>
    %7 = arith.addf %3, %6 : vector<8x32xf32>
    %c0_6 = arith.constant 0 : index
    %c0_7 = arith.constant 0 : index
    %8 = vector.load %arg8[%c0_6, %c0_7] : memref<8x32xf32, #tpu.memory_space<vmem>>, vector<8x32xf32>
    tpu.vector_store %arg8[%c0_6, %c0_7], %7 {strides = array<i32>} : memref<8x32xf32, #tpu.memory_space<vmem>>, vector<8x32xf32>,
    %c0_i32_8 = arith.constant 0 : i32
    %9 = arith.cmpi eq, %arg1, %c0_i32_8 : i32
    %10 = arith.extui %9 : i1 to i32
    %c0_i32_9 = arith.constant 0 : i32
    %11 = arith.cmpi ne, %10, %c0_i32_9 : i32
    scf.if %11 {
      %c0_10 = arith.constant 0 : index
      %c0_11 = arith.constant 0 : index
      %12 = vector.load %arg8[%c0_10, %c0_11] : memref<8x32xf32, #tpu.memory_space<vmem>>, vector<8x32xf32>
      %c0_12 = arith.constant 0 : index
      %c0_13 = arith.constant 0 : index
      %13 = vector.load %arg4[%c0_12, %c0_13] : memref<1x32xf32, #tpu.memory_space<vmem>>, vector<1x32xf32>
      %14 = vector.broadcast %13 : vector<1x32xf32> to vector<8x32xf32>
      %15 = arith.addf %12, %14 : vector<8x32xf32>
      %cst_14 = arith.constant 5.000000e-01 : f32
      %16 = vector.broadcast %cst_14 : f32 to vector<8x32xf32>
      %17 = arith.mulf %16, %15 : vector<8x32xf32>
      %cst_15 = arith.constant 0.707106769 : f32
      %18 = vector.broadcast %cst_15 : f32 to vector<8x32xf32>
      %19 = arith.mulf %15, %18 : vector<8x32xf32>
      %20 = math.absf %19 : vector<8x32xf32>
      %cst_16 = arith.constant 0.327591091 : f32
      %21 = vector.broadcast %cst_16 : f32 to vector<8x32xf32>
      %22 = arith.mulf %21, %20 : vector<8x32xf32>
      %cst_17 = arith.constant 1.000000e+00 : f32
      %23 = vector.broadcast %cst_17 : f32 to vector<8x32xf32>
      %24 = arith.addf %23, %22 : vector<8x32xf32>
      %cst_18 = arith.constant 1.000000e+00 : f32
      %25 = vector.broadcast %cst_18 : f32 to vector<8x32xf32>
      %26 = arith.divf %25, %24 : vector<8x32xf32>
      %cst_19 = arith.constant 1.06140542 : f32
      %27 = vector.broadcast %cst_19 : f32 to vector<8x32xf32>
      %28 = arith.mulf %27, %26 : vector<8x32xf32>
      %cst_20 = arith.constant -1.45315206 : f32
      %29 = vector.broadcast %cst_20 : f32 to vector<8x32xf32>
      %30 = arith.addf %28, %29 : vector<8x32xf32>
      %31 = arith.mulf %30, %26 : vector<8x32xf32>
      %cst_21 = arith.constant 1.42141378 : f32
      %32 = vector.broadcast %cst_21 : f32 to vector<8x32xf32>
      %33 = arith.addf %31, %32 : vector<8x32xf32>
      %34 = arith.mulf %33, %26 : vector<8x32xf32>
      %cst_22 = arith.constant -0.284496725 : f32
      %35 = vector.broadcast %cst_22 : f32 to vector<8x32xf32>
      %36 = arith.addf %34, %35 : vector<8x32xf32>
      %37 = arith.mulf %36, %26 : vector<8x32xf32>
      %cst_23 = arith.constant 0.254829586 : f32
      %38 = vector.broadcast %cst_23 : f32 to vector<8x32xf32>
      %39 = arith.addf %37, %38 : vector<8x32xf32>
      %40 = arith.mulf %39, %26 : vector<8x32xf32>
      %cst_24 = arith.constant 0.000000e+00 : f32
      %41 = vector.broadcast %cst_24 : f32 to vector<8x32xf32>
      %42 = arith.subf %41, %20 : vector<8x32xf32>
      %43 = arith.mulf %42, %20 : vector<8x32xf32>
      %44 = math.exp %43 : vector<8x32xf32>
      %45 = arith.mulf %40, %44 : vector<8x32xf32>
      %cst_25 = arith.constant 1.000000e+00 : f32
      %46 = vector.broadcast %cst_25 : f32 to vector<8x32xf32>
      %47 = arith.subf %46, %45 : vector<8x32xf32>
      %cst_26 = arith.constant 0.000000e+00 : f32
      %48 = vector.broadcast %cst_26 : f32 to vector<8x32xf32>
      %49 = arith.cmpf oge, %19, %48 : vector<8x32xf32>
      %cst_27 = arith.constant 0.000000e+00 : f32
      %50 = vector.broadcast %cst_27 : f32 to vector<8x32xf32>
      %51 = arith.subf %50, %47 : vector<8x32xf32>
      %52 = arith.select %49, %47, %51 : vector<8x32xi1>, vector<8x32xf32>
      %cst_28 = arith.constant 1.000000e+00 : f32
      %53 = vector.broadcast %cst_28 : f32 to vector<8x32xf32>
      %54 = arith.addf %53, %52 : vector<8x32xf32>
      %55 = arith.mulf %17, %54 : vector<8x32xf32>
      %cst_29 = arith.constant dense<0.000000e+00> : vector<8xf32>
      %56 = vector.multi_reduction <add>, %55, %cst_29 [1] : vector<8x32xf32> to vector<8xf32>
      %57 = vector.shape_cast %56 : vector<8xf32> to vector<8x1xf32>
      %cst_30 = arith.constant 3.200000e+01 : f32
      %58 = vector.broadcast %cst_30 : f32 to vector<8x1xf32>
      %59 = arith.divf %57, %58 : vector<8x1xf32>
      %60 = vector.broadcast %59 : vector<8x1xf32> to vector<8x32xf32>
      %61 = arith.subf %55, %60 : vector<8x32xf32>
      %62 = arith.mulf %61, %61 : vector<8x32xf32>
      %cst_31 = arith.constant dense<0.000000e+00> : vector<8xf32>
      %63 = vector.multi_reduction <add>, %62, %cst_31 [1] : vector<8x32xf32> to vector<8xf32>
      %64 = vector.shape_cast %63 : vector<8xf32> to vector<8x1xf32>
      %cst_32 = arith.constant 3.200000e+01 : f32
      %65 = vector.broadcast %cst_32 : f32 to vector<8x1xf32>
      %66 = arith.divf %64, %65 : vector<8x1xf32>
      %67 = vector.broadcast %59 : vector<8x1xf32> to vector<8x32xf32>
      %68 = arith.subf %55, %67 : vector<8x32xf32>
      %cst_33 = arith.constant 9.99999997E-7 : f32
      %69 = vector.broadcast %cst_33 : f32 to vector<8x1xf32>
      %70 = arith.addf %66, %69 : vector<8x1xf32>
      %71 = math.rsqrt %70 : vector<8x1xf32>
      %72 = vector.broadcast %71 : vector<8x1xf32> to vector<8x32xf32>
      %73 = arith.mulf %68, %72 : vector<8x32xf32>
      %c0_34 = arith.constant 0 : index
      %c0_35 = arith.constant 0 : index
      %74 = vector.load %arg5[%c0_34, %c0_35] : memref<1x32xf32, #tpu.memory_space<vmem>>, vector<1x32xf32>
      %75 = vector.broadcast %74 : vector<1x32xf32> to vector<8x32xf32>
      %76 = arith.mulf %73, %75 : vector<8x32xf32>
      %c0_36 = arith.constant 0 : index
      %c0_37 = arith.constant 0 : index
      %77 = vector.load %arg6[%c0_36, %c0_37] : memref<1x32xf32, #tpu.memory_space<vmem>>, vector<1x32xf32>
      %78 = vector.broadcast %77 : vector<1x32xf32> to vector<8x32xf32>
      %79 = arith.addf %76, %78 : vector<8x32xf32>
      %80 = arith.truncf %79 : vector<8x32xf32> to vector<8x32xbf16>
      %c0_38 = arith.constant 0 : index
      %c0_39 = arith.constant 0 : index
      %81 = vector.load %arg7[%c0_38, %c0_39] : memref<8x32xbf16, #tpu.memory_space<vmem>>, vector<8x32xbf16>
      tpu.vector_store %arg7[%c0_38, %c0_39], %80 {strides = array<i32>} : memref<8x32xbf16, #tpu.memory_space<vmem>>, vector<8x32xbf16>,
    } else {
    }
    return
  }
  func.func @transform_0(%arg0: i32, %arg1: i32) -> (i32, i32) {
    %c0_i32 = arith.constant 0 : i32
    return %arg0, %arg1 : i32, i32
  }
  func.func @transform_1(%arg0: i32, %arg1: i32) -> (i32, i32) {
    %c0_i32 = arith.constant 0 : i32
    %c0_i32_0 = arith.constant 0 : i32
    return %arg1, %c0_i32 : i32, i32
  }
  func.func @transform_2(%arg0: i32, %arg1: i32) -> (i32, i32) {
    %c0_i32 = arith.constant 0 : i32
    %c0_i32_0 = arith.constant 0 : i32
    %c0_i32_1 = arith.constant 0 : i32
    return %c0_i32, %c0_i32_0 : i32, i32
  }
  func.func @transform_3(%arg0: i32, %arg1: i32) -> (i32, i32) {
    %c0_i32 = arith.constant 0 : i32
    %c0_i32_0 = arith.constant 0 : i32
    %c0_i32_1 = arith.constant 0 : i32
    return %c0_i32, %c0_i32_0 : i32, i32
  }
  func.func @transform_4(%arg0: i32, %arg1: i32) -> (i32, i32) {
    %c0_i32 = arith.constant 0 : i32
    %c0_i32_0 = arith.constant 0 : i32
    %c0_i32_1 = arith.constant 0 : i32
    return %c0_i32, %c0_i32_0 : i32, i32
  }
  func.func @transform_5(%arg0: i32, %arg1: i32) -> (i32, i32) {
    %c0_i32 = arith.constant 0 : i32
    %c0_i32_0 = arith.constant 0 : i32
    return %arg0, %c0_i32 : i32, i32
  }
}

module attributes {stable_mosaic.version = 11 : i64} {
  func.func @_mm_kernel(%arg0: i32, %arg1: i32, %arg2: i32, %arg3: memref<8x32xbf16, #tpu.memory_space<vmem>>, %arg4: memref<32x64xbf16, #tpu.memory_space<vmem>>, %arg5: memref<1x64xf32, #tpu.memory_space<vmem>>, %arg6: memref<8x64xf32, #tpu.memory_space<vmem>>, %arg7: memref<8x64xf32, #tpu.memory_space<vmem>>) attributes {dimension_semantics = [#tpu.dimension_semantics<parallel>, #tpu.dimension_semantics<parallel>, #tpu.dimension_semantics<arbitrary>], iteration_bounds = array<i64: 2, 1, 1>, scalar_prefetch = 0 : i64, scratch_operands = 1 : i64, tpu.core_type = #tpu.core_type<tc>, window_params = [{transform_indices = @transform_0, window_bounds = array<i64: 8, 32>}, {transform_indices = @transform_1, window_bounds = array<i64: 32, 64>}, {transform_indices = @transform_2, window_bounds = array<i64: 1, 64>}, {transform_indices = @transform_3, window_bounds = array<i64: 8, 64>}]} {
    %c0_i32 = arith.constant 0 : i32
    %0 = arith.cmpi eq, %arg2, %c0_i32 : i32
    %1 = arith.extui %0 : i1 to i32
    %c0_i32_0 = arith.constant 0 : i32
    %2 = arith.cmpi ne, %1, %c0_i32_0 : i32
    scf.if %2 {
      %cst_10 = arith.constant 0.000000e+00 : f32
      %12 = vector.broadcast %cst_10 : f32 to vector<8x64xf32>
      %c0_11 = arith.constant 0 : index
      %c0_12 = arith.constant 0 : index
      %13 = vector.load %arg7[%c0_11, %c0_12] : memref<8x64xf32, #tpu.memory_space<vmem>>, vector<8x64xf32>
      tpu.vector_store %arg7[%c0_11, %c0_12], %12 {strides = array<i32>} : memref<8x64xf32, #tpu.memory_space<vmem>>, vector<8x64xf32>,
    } else {
    }
    %c0 = arith.constant 0 : index
    %c0_1 = arith.constant 0 : index
    %3 = vector.load %arg7[%c0, %c0_1] : memref<8x64xf32, #tpu.memory_space<vmem>>, vector<8x64xf32>
    %c0_2 = arith.constant 0 : index
    %c0_3 = arith.constant 0 : index
    %4 = vector.load %arg3[%c0_2, %c0_3] : memref<8x32xbf16, #tpu.memory_space<vmem>>, vector<8x32xbf16>
    %c0_4 = arith.constant 0 : index
    %c0_5 = arith.constant 0 : index
    %5 = vector.load %arg4[%c0_4, %c0_5] : memref<32x64xbf16, #tpu.memory_space<vmem>>, vector<32x64xbf16>
    %cst = arith.constant dense<0.000000e+00> : vector<8x64xf32>
    %6 = tpu.matmul %4, %5, %cst {dimension_numbers = #tpu.dot_dimension_numbers<[1], [0], [0], [1], [0, 0, 1, 1], [], []>} : vector<8x32xbf16>, vector<32x64xbf16>, vector<8x64xf32> -> vector<8x64xf32>
    %7 = arith.addf %3, %6 : vector<8x64xf32>
    %c0_6 = arith.constant 0 : index
    %c0_7 = arith.constant 0 : index
    %8 = vector.load %arg7[%c0_6, %c0_7] : memref<8x64xf32, #tpu.memory_space<vmem>>, vector<8x64xf32>
    tpu.vector_store %arg7[%c0_6, %c0_7], %7 {strides = array<i32>} : memref<8x64xf32, #tpu.memory_space<vmem>>, vector<8x64xf32>,
    %c0_i32_8 = arith.constant 0 : i32
    %9 = arith.cmpi eq, %arg2, %c0_i32_8 : i32
    %10 = arith.extui %9 : i1 to i32
    %c0_i32_9 = arith.constant 0 : i32
    %11 = arith.cmpi ne, %10, %c0_i32_9 : i32
    scf.if %11 {
      %c0_10 = arith.constant 0 : index
      %c0_11 = arith.constant 0 : index
      %12 = vector.load %arg7[%c0_10, %c0_11] : memref<8x64xf32, #tpu.memory_space<vmem>>, vector<8x64xf32>
      %c0_12 = arith.constant 0 : index
      %c0_13 = arith.constant 0 : index
      %13 = vector.load %arg5[%c0_12, %c0_13] : memref<1x64xf32, #tpu.memory_space<vmem>>, vector<1x64xf32>
      %14 = vector.broadcast %13 : vector<1x64xf32> to vector<8x64xf32>
      %15 = arith.addf %12, %14 : vector<8x64xf32>
      %c0_14 = arith.constant 0 : index
      %c0_15 = arith.constant 0 : index
      %16 = vector.load %arg6[%c0_14, %c0_15] : memref<8x64xf32, #tpu.memory_space<vmem>>, vector<8x64xf32>
      tpu.vector_store %arg6[%c0_14, %c0_15], %15 {strides = array<i32>} : memref<8x64xf32, #tpu.memory_space<vmem>>, vector<8x64xf32>,
    } else {
    }
    return
  }
  func.func @transform_0(%arg0: i32, %arg1: i32, %arg2: i32) -> (i32, i32) {
    %c0_i32 = arith.constant 0 : i32
    return %arg0, %arg2 : i32, i32
  }
  func.func @transform_1(%arg0: i32, %arg1: i32, %arg2: i32) -> (i32, i32) {
    %c0_i32 = arith.constant 0 : i32
    return %arg2, %arg1 : i32, i32
  }
  func.func @transform_2(%arg0: i32, %arg1: i32, %arg2: i32) -> (i32, i32) {
    %c0_i32 = arith.constant 0 : i32
    %c0_i32_0 = arith.constant 0 : i32
    return %c0_i32, %arg1 : i32, i32
  }
  func.func @transform_3(%arg0: i32, %arg1: i32, %arg2: i32) -> (i32, i32) {
    %c0_i32 = arith.constant 0 : i32
    return %arg0, %arg1 : i32, i32
  }
}

</mosaic_0001>

<bundles_post_ra>
// kernel: _lambda_.32
= control target key start
LH: loop header
LB: loop body
LE: loop exit
PB: predicated region body
PF: predicated region fallthrough
CT: control target
= control target key end

     0   :  { %s639_s21 = smov 0   ;;  %s641_s22 = smov 0   ;;  %s700_s0 = inlined_call_operand.vmem [shape: bf16[16,32], index: 0, kind: input, shape index: {}]   ;;  %s701_s1 = inlined_call_operand.vmem [shape: bf16[32,32], index: 1, kind: input, shape index: {}]   ;;  %s702_s2 = inlined_call_operand.vmem [shape: f32[1,32], index: 2, kind: input, shape index: {}]   ;;  %s703_s3 = inlined_call_operand.vmem [shape: f32[1,32], index: 3, kind: input, shape index: {}]   ;;  %s704_s4 = inlined_call_operand.vmem [shape: f32[1,32], index: 4, kind: input, shape index: {}]   ;;  %s705_s5 = inlined_call_operand.vmem [shape: bf16[16,32], index: 5, kind: input, shape index: {}]   ;;  %s706_s6 = inlined_call_operand.vmem [shape: bf16[16,32], index: 6, kind: output, shape index: {}]  }
   0x1   :  { %s643_s23 = smov 0  }
   0x2 LB: > { %s28_s24 = sadd.s32 1, %s596_s22  ;;  %p525_p0 = scmp.ge.s32.totalorder %s600_s23, 1  ;;  %s600_s23 = sphi %s643_s23, %s16_s23   ;;  %s596_s22 = sphi %s641_s22, %s708_s22   ;;  %s592_s21 = sphi %s639_s21, %s707_s21  }
   0x3   : > { %p30_p1 = scmp.ge.s32.totalorder %s28_s24, 2  ;;  %p248_p2 = scmp.lt.s32.totalorder %s600_s23, 3 }
   0x5   : > { %s710_s24 = smov (%p30_p1, %s28_s24), 0  ;;  %p249_p3 = pnand %p525_p0, %p248_p2 }
   0x6   : > { %v574_v0 = vld [vmem:[%s701_s1] sm:$0xff] (!%p249_p3)   ;;  %v602_v1 = vmov (!%p249_p3), 0.0   ;;  %v575_v2 = vld [vmem:[%s701_s1 + $0x8] sm:$0xff] (!%p249_p3)   ;;  %vm603_vm0 = vmmov (!%p249_p3), 0   ;;  %p288_p4 = scmp.lt.s32.totalorder (!%p249_p3), %s592_s21, 1  ;;  %vm314_vm1 = vcmask (!%p249_p3), 261120  }
   0x7   : > { %252 = sbr.rel (%p249_p3) target bundleno = 560 (0x230), region = 44  ;;  %540 = vmatprep.subr.bf16.mxu0 (!%p249_p3), %v602_v1  ;;  %544 = vmatprep.mubr.msk.bf16.mxu0 (!%p249_p3), %vm603_vm0, %v602_v1  ;;  %315 = vst.msk [vmem:[#allocation2] sm:$0xff] (!%p249_p3), %vm314_vm1, %v602_v1  ;;  %v532_v11 = vld [vmem:[%s702_s2] ss:$0 sm:$0xff] (!%p249_p3)  ;;  %vm426_vm2 = vcmask (!%p249_p3), 257024  }
   0x8   : > { %541 = vmatpush3.bf16.msra.mxu0 (!%p249_p3), %v574_v0  ;;  %v533_v26 = vld [vmem:[%s703_s3] ss:$0 sm:$0xff] (!%p249_p3) }
   0x9   : > { %542 = vmatprep.subr.bf16.mxu0 (!%p249_p3), %v602_v1  ;;  %v534_v28 = vld [vmem:[%s704_s4] ss:$0 sm:$0xff] (!%p249_p3) }
   0xc   : > { %543 = vmatpush3.bf16.msra.mxu0 (!%p249_p3), %v575_v2 }
   0xe   : > { %s712_s21 = smov (!%p288_p4, %s592_s21), 1  ;;  %v316_v4 = vld [vmem:[#allocation2] sm:$0xff] }
   0xf   : > { %s664_s29 = sshll.u32 %s712_s21, 2 }
  0x10   : > { %s294_s8 = scalar_lea.vmem %s700_s0, %s664_s29  ;;  %s304_s11 = scalar_lea.vmem %s705_s5, %s664_s29 }
  0x11   : > { %v317_v3 = vld [vmem:[%s294_s8] sm:$0xf]  ;;  %s308_s20 = scalar_lea.vmem %s706_s6, %s664_s29 }
  0x12   : > { %545 = vmatmul.mubr.msk.bf16.vlgmr.msra.gmra.mrb[0].mxu0 %vm314_vm1, %v317_v3  ;;  %v392_v10 = vld [vmem:[%s304_s11] sm:$0xf] }
  0x13   : > { %v393_v12 = vunpack.c.l.bf16 %v392_v10 }
  0xe5   : > { %v372_v5 = vpop.f32.mrb[0].mxu0 }
  0xe6   : > { %v378_v6 = vadd.f32 %v372_v5, %v316_v4  ;;  %v546_v7 = vpop.f32.mrb[1].mxu0 }
  0xe7   : > { %v375_v8 = vpop.f32.mrb[2].mxu0 }
  0xe8   : > { %379 = vst.msk [vmem:[#allocation2] sm:$0xff] %vm314_vm1, %v378_v6  ;;  %v547_v9 = vpop.f32.mrb[3].mxu0 }
  0xef   : > { %v383_v13 = vld [vmem:[#allocation2] sm:$0xff] }
  0xf0   : > { %v391_v14 = vadd.f32 %v532_v11, %v383_v13 }
  0xf2   : > { %v394_v15 = vadd.f32 %v393_v12, %v391_v14 }
  0xf4   : > { %v395_v16 = vsel %vm314_vm1, %v394_v15, 0.0 }
  0xf5   : > { %396 = vadd.xlane.f32.xlu0 %v395_v16 }
 0x182   : > { %v397_v17 = vpop.xlane.xlu0 %396 }
 0x183   : > { %v399_v18 = vmul.f32 0.03125, %v397_v17 }
 0x185   : > { %v400_v19 = vsub.f32 %v394_v15, %v399_v18 }
 0x187   : > { %v401_v20 = vmul.f32 %v400_v19, %v400_v19 }
 0x189   : > { %v402_v21 = vsel %vm314_vm1, %v401_v20, 0.0 }
 0x18a   : > { %403 = vadd.xlane.f32.xlu0 %v402_v21 }
 0x217   : > { %v404_v22 = vpop.xlane.xlu0 %403 }
 0x218   : > { %v405_v23 = vmul.f32 0.03125, %v404_v22 }
 0x21a   : > { %v406_v24 = vadd.f32 1e-12, %v405_v23 }
 0x21c   : > { %576 = vrsqrt.f32 %v406_v24 }
 0x226   : > { %v577_v25 = vpop.eup %576 }
 0x227   : > { %v408_v27 = vmul.f32 %v577_v25, %v400_v19 }
 0x229   : > { %v416_v29 = vmul.f32 %v533_v26, %v408_v27 }
 0x22b   : > { %v424_v30 = vadd.f32 %v534_v28, %v416_v29 }
 0x22d   : > { %v425_v31 = vpack.c.bf16 %v424_v30, %v424_v30 }
 0x22f   : > { %427 = vst.msk [vmem:[%s308_s20] sm:$0xf] %vm426_vm2, %v425_v31 }
 0x230 PF: > { %s16_s23 = sadd.s32 1, %s600_s23   ;;  %s707_s21 = smov %s596_s22 }
 0x231   : > { %p13_p5 = scmp.ge.s32.totalorder %s16_s23, 4   ;;  %s708_s22 = smov %s710_s24 }
 0x233   :  { %15 = sbr.rel (!%p13_p5) target bundleno = 2 (0x2), region = 88 }

// kernel: _lambda_.33
= control target key start
LH: loop header
LB: loop body
LE: loop exit
PB: predicated region body
PF: predicated region fallthrough
CT: control target
= control target key end

     0   :  { %s577_s12 = smov 0   ;;  %s579_s13 = smov 0   ;;  %s628_s0 = inlined_call_operand.vmem [shape: bf16[16,32], index: 0, kind: input, shape index: {}]   ;;  %s629_s1 = inlined_call_operand.vmem [shape: bf16[32,64], index: 1, kind: input, shape index: {}]   ;;  %s630_s2 = inlined_call_operand.vmem [shape: f32[1,64], index: 2, kind: input, shape index: {}]   ;;  %s631_s3 = inlined_call_operand.vmem [shape: bf16[16,64], index: 3, kind: output, shape index: {}]  }
   0x1   :  { %s581_s14 = smov 0  }
   0x2 LB: > { %s32_s15 = sadd.s32 1, %s549_s13  ;;  %p479_p0 = scmp.ge.s32.totalorder %s553_s14, 1  ;;  %s553_s14 = sphi %s581_s14, %s13_s14   ;;  %s549_s13 = sphi %s579_s13, %s633_s13   ;;  %s545_s12 = sphi %s577_s12, %s632_s12  }
   0x3   : > { %p34_p1 = scmp.ge.s32.totalorder %s32_s15, 2  ;;  %p186_p2 = scmp.lt.s32.totalorder %s553_s14, 3 }
   0x5   : > { %s635_s15 = smov (%p34_p1, %s32_s15), 0  ;;  %p187_p3 = pnand %p479_p0, %p186_p2 }
   0x6   : > { %vm256_vm0 = vcmask (!%p187_p3), 523264   ;;  %v555_v0 = vmov (!%p187_p3), 0.0   ;;  %v525_v1 = vld [vmem:[%s629_s1] sm:$0xff] (!%p187_p3)   ;;  %vm556_vm1 = vmmov (!%p187_p3), 0   ;;  %p225_p4 = scmp.lt.s32.totalorder (!%p187_p3), %s545_s12, 1  ;;  %v526_v2 = vld [vmem:[%s629_s1 + $0x8] sm:$0xff] (!%p187_p3)  }
   0x7   : > { %190 = sbr.rel (%p187_p3) target bundleno = 293 (0x125), region = 32  ;;  %257 = vst.msk [vmem:[#allocation2] sm:$0xff] (!%p187_p3), %vm256_vm0, %v555_v0  ;;  %491 = vmatprep.subr.bf16.mxu0 (!%p187_p3), %v555_v0  ;;  %495 = vmatprep.mubr.msk.bf16.mxu0 (!%p187_p3), %vm556_vm1, %v555_v0  ;;  %vm276_vm2 = vcmask (!%p187_p3), 261120   ;;  %v485_v10 = vld [vmem:[%s630_s2] ss:$0 sm:$0xff] (!%p187_p3)  ;;  %vm363_vm4 = vcmask (!%p187_p3), 519168  }
   0x8   : > { %492 = vmatpush3.bf16.msra.mxu0 (!%p187_p3), %v525_v1 }
   0x9   : > { %493 = vmatprep.subr.bf16.mxu0 (!%p187_p3), %v555_v0 }
   0xc   : > { %494 = vmatpush3.bf16.msra.mxu0 (!%p187_p3), %v526_v2 }
   0xe   : > { %s637_s12 = smov (!%p225_p4, %s545_s12), 1  ;;  %v258_v4 = vld [vmem:[#allocation2] sm:$0xff] }
   0xf   : > { %s480_s20 = sshll.u32 %s637_s12, 2 }
  0x10   : > { %s231_s23 = scalar_lea.vmem %s628_s0, %s480_s20  ;;  %s250_s28 = scalar_lea.vmem %s631_s3, %s480_s20 }
  0x11   : > { %v259_v3 = vld [vmem:[%s231_s23] sm:$0xf] }
  0x12   : > { %496 = vmatmul.mubr.msk.bf16.vlgmr.msra.gmra.mrb[0].mxu0 %vm276_vm2, %v259_v3 }
  0xe5   : > { %v314_v5 = vpop.f32.mrb[0].mxu0 }
  0xe6   : > { %v320_v6 = vadd.f32 %v314_v5, %v258_v4  ;;  %v497_v7 = vpop.f32.mrb[1].mxu0 }
  0xe7   : > { %v317_v8 = vpop.f32.mrb[2].mxu0 }
  0xe8   : > { %322 = vst.msk [vmem:[#allocation2] sm:$0xff] %vm256_vm0, %v320_v6  ;;  %v498_v9 = vpop.f32.mrb[3].mxu0 }
  0xef   : > { %v326_v11 = vld [vmem:[#allocation2] sm:$0xff] }
  0xf0   : > { %v334_v12 = vadd.f32 %v485_v10, %v326_v11 }
  0xf2   : > { %v336_v13 = vmul.f32 0.70710677, %v334_v12  ;;  %v335_v35 = vmul.f32 0.5, %v334_v12 }
  0xf4   : > { %v337_v14 = vand.u32 2147483647, %v336_v13  ;;  %vm357_vm3 = vcmp.ge.f32.partialorder %v336_v13, 0.0 }
  0xf6   : > { %v338_v15 = vmul.f32 0.3275911, %v337_v14  ;;  %v351_v17 = vsub.f32 0.0, %v337_v14 }
  0xf8   : > { %v339_v16 = vadd.f32 1.0, %v338_v15  ;;  %v352_v19 = vmul.f32 %v351_v17, %v337_v14 }
  0xfa   : > { %527 = vrcp.f32 %v339_v16  ;;  %v353_v22 = vmul.f32 1.442695, %v352_v19 }
  0xfc   : > { %529 = vpow2.f32 %v353_v22 }
 0x104   : > { %v528_v18 = vpop.eup %527 }
 0x105   : > { %v342_v20 = vmul.f32 1.0614054, %v528_v18 }
 0x106   : > { %v530_v30 = vpop.eup %529 }
 0x107   : > { %v343_v21 = vadd.f32 -1.4531521, %v342_v20 }
 0x109   : > { %v344_v23 = vmul.f32 %v528_v18, %v343_v21 }
 0x10b   : > { %v345_v24 = vadd.f32 1.4214138, %v344_v23 }
 0x10d   : > { %v346_v25 = vmul.f32 %v528_v18, %v345_v24 }
 0x10f   : > { %v347_v26 = vadd.f32 -0.28449672, %v346_v25 }
 0x111   : > { %v348_v27 = vmul.f32 %v528_v18, %v347_v26 }
 0x113   : > { %v349_v28 = vadd.f32 0.2548296, %v348_v27 }
 0x115   : > { %v350_v29 = vmul.f32 %v528_v18, %v349_v28 }
 0x117   : > { %v355_v31 = vmul.f32 %v530_v30, %v350_v29 }
 0x119   : > { %v356_v32 = vsub.f32 1.0, %v355_v31 }
 0x11b   : > { %v358_v33 = vsub.f32 0.0, %v356_v32 }
 0x11d   : > { %v359_v34 = vsel %vm357_vm3, %v356_v32, %v358_v33 }
 0x11e   : > { %v360_v36 = vadd.f32 1.0, %v359_v34 }
 0x120   : > { %v361_v37 = vmul.f32 %v360_v36, %v335_v35 }
 0x122   : > { %v362_v38 = vpack.c.bf16 %v361_v37, %v361_v37 }
 0x124   : > { %364 = vst.msk [vmem:[%s250_s28] sm:$0xf] %vm363_vm4, %v362_v38 }
 0x125 PF: > { %s13_s14 = sadd.s32 1, %s553_s14   ;;  %s632_s12 = smov %s549_s13 }
 0x126   : > { %p10_p5 = scmp.ge.s32.totalorder %s13_s14, 4   ;;  %s633_s13 = smov %s635_s15 }
 0x128   :  { %12 = sbr.rel (!%p10_p5) target bundleno = 2 (0x2), region = 76 }

// kernel: _lambda_.30
= control target key start
LH: loop header
LB: loop body
LE: loop exit
PB: predicated region body
PF: predicated region fallthrough
CT: control target
= control target key end

     0   :  { %s546_s12 = smov 0   ;;  %s548_s13 = smov 0   ;;  %s590_s0 = inlined_call_operand.vmem [shape: bf16[16,32], index: 0, kind: input, shape index: {}]   ;;  %s591_s1 = inlined_call_operand.vmem [shape: bf16[32,96], index: 1, kind: input, shape index: {}]   ;;  %s592_s2 = inlined_call_operand.vmem [shape: f32[1,96], index: 2, kind: input, shape index: {}]   ;;  %s593_s3 = inlined_call_operand.vmem [shape: bf16[16,96], index: 3, kind: output, shape index: {}]  }
   0x1   :  { %s550_s14 = smov 0  }
   0x2 LB: > { %s32_s15 = sadd.s32 1, %s518_s13  ;;  %p452_p0 = scmp.ge.s32.totalorder %s522_s14, 1  ;;  %s522_s14 = sphi %s550_s14, %s13_s14   ;;  %s518_s13 = sphi %s548_s13, %s595_s13   ;;  %s514_s12 = sphi %s546_s12, %s594_s12  }
   0x3   : > { %p34_p1 = scmp.ge.s32.totalorder %s32_s15, 2  ;;  %p186_p2 = scmp.lt.s32.totalorder %s522_s14, 3 }
   0x5   : > { %s597_s15 = smov (%p34_p1, %s32_s15), 0  ;;  %p187_p3 = pnand %p452_p0, %p186_p2 }
   0x6   : > { %vm256_vm0 = vcmask (!%p187_p3), 785408   ;;  %v524_v0 = vmov (!%p187_p3), 0.0   ;;  %v498_v1 = vld [vmem:[%s591_s1] sm:$0xff] (!%p187_p3)   ;;  %vm525_vm1 = vmmov (!%p187_p3), 0   ;;  %p225_p4 = scmp.lt.s32.totalorder (!%p187_p3), %s514_s12, 1  ;;  %v499_v2 = vld [vmem:[%s591_s1 + $0x8] sm:$0xff] (!%p187_p3)  }
   0x7   : > { %190 = sbr.rel (%p187_p3) target bundleno = 245 (0xf5), region = 32  ;;  %257 = vst.msk [vmem:[#allocation2] sm:$0xff] (!%p187_p3), %vm256_vm0, %v524_v0  ;;  %464 = vmatprep.subr.bf16.mxu0 (!%p187_p3), %v524_v0  ;;  %468 = vmatprep.mubr.msk.bf16.mxu0 (!%p187_p3), %vm525_vm1, %v524_v0  ;;  %vm276_vm2 = vcmask (!%p187_p3), 261120   ;;  %v458_v10 = vld [vmem:[%s592_s2] ss:$0 sm:$0xff] (!%p187_p3)  ;;  %vm336_vm3 = vcmask (!%p187_p3), 781312  }
   0x8   : > { %465 = vmatpush3.bf16.msra.mxu0 (!%p187_p3), %v498_v1 }
   0x9   : > { %466 = vmatprep.subr.bf16.mxu0 (!%p187_p3), %v524_v0 }
   0xc   : > { %467 = vmatpush3.bf16.msra.mxu0 (!%p187_p3), %v499_v2 }
   0xe   : > { %s599_s12 = smov (!%p225_p4, %s514_s12), 1  ;;  %v258_v4 = vld [vmem:[#allocation2] sm:$0xff] }
   0xf   : > { %s453_s20 = sshll.u32 %s599_s12, 2 }
  0x10   : > { %s231_s23 = scalar_lea.vmem %s590_s0, %s453_s20  ;;  %s250_s28 = scalar_lea.vmem %s593_s3, %s453_s20 }
  0x11   : > { %v259_v3 = vld [vmem:[%s231_s23] sm:$0xf] }
  0x12   : > { %469 = vmatmul.mubr.msk.bf16.vlgmr.msra.gmra.mrb[0].mxu0 %vm276_vm2, %v259_v3 }
  0xe5   : > { %v314_v5 = vpop.f32.mrb[0].mxu0 }
  0xe6   : > { %v320_v6 = vadd.f32 %v314_v5, %v258_v4  ;;  %v470_v7 = vpop.f32.mrb[1].mxu0 }
  0xe7   : > { %v317_v8 = vpop.f32.mrb[2].mxu0 }
  0xe8   : > { %322 = vst.msk [vmem:[#allocation2] sm:$0xff] %vm256_vm0, %v320_v6  ;;  %v471_v9 = vpop.f32.mrb[3].mxu0 }
  0xef   : > { %v326_v11 = vld [vmem:[#allocation2] sm:$0xff] }
  0xf0   : > { %v334_v12 = vadd.f32 %v458_v10, %v326_v11 }
  0xf2   : > { %v335_v13 = vpack.c.bf16 %v334_v12, %v334_v12 }
  0xf4   : > { %337 = vst.msk [vmem:[%s250_s28] sm:$0xf] %vm336_vm3, %v335_v13 }
  0xf5 PF: > { %s13_s14 = sadd.s32 1, %s522_s14   ;;  %s594_s12 = smov %s518_s13 }
  0xf6   : > { %p10_p5 = scmp.ge.s32.totalorder %s13_s14, 4   ;;  %s595_s13 = smov %s597_s15 }
  0xf8   :  { %12 = sbr.rel (!%p10_p5) target bundleno = 2 (0x2), region = 76 }

// kernel: _lambda_.31
= control target key start
LH: loop header
LB: loop body
LE: loop exit
PB: predicated region body
PF: predicated region fallthrough
CT: control target
= control target key end

     0   :  { %s1090_s15 = smov 0   ;;  %s1092_s16 = smov 0   ;;  %s1210_s0 = inlined_call_operand.vmem [shape: bf16[2,8,32], index: 0, kind: input, shape index: {}]   ;;  %s1211_s1 = inlined_call_operand.vmem [shape: bf16[2,8,32], index: 1, kind: input, shape index: {}]   ;;  %s1212_s2 = inlined_call_operand.vmem [shape: bf16[2,8,32], index: 2, kind: input, shape index: {}]   ;;  %s1213_s3 = inlined_call_operand.vmem [shape: f32[2,8,8], index: 3, kind: input, shape index: {}]   ;;  %s1214_s4 = inlined_call_operand.vmem [shape: bf16[2,8,32], index: 4, kind: output, shape index: {}]  }
   0x1   :  { %s1094_s17 = smov 0  }
   0x2 LB: > { %s26_s18 = sadd.s32 1, %s1051_s16  ;;  %p899_p0 = scmp.ge.s32.totalorder %s1055_s17, 1  ;;  %s1055_s17 = sphi %s1094_s17, %s14_s17   ;;  %s1051_s16 = sphi %s1092_s16, %s1216_s16   ;;  %s1047_s15 = sphi %s1090_s15, %s1215_s15  }
   0x3   : > { %p28_p1 = scmp.ge.s32.totalorder %s26_s18, 2  ;;  %p217_p2 = scmp.lt.s32.totalorder %s1055_s17, 3 }
   0x5   : > { %s1218_s18 = smov (%p28_p1, %s26_s18), 0  ;;  %p218_p3 = pnand %p899_p0, %p217_p2 }
   0x6   : > { %p265_p4 = scmp.lt.s32.totalorder (!%p218_p3), %s1047_s15, 1  ;;  %v1057_v0 = vmov (!%p218_p3), 0.0   ;;  %vm1058_vm0 = vmmov (!%p218_p3), 0   ;;  %vm302_vm1 = vcmask (!%p218_p3), 64512   ;;  %s1059_s30 = smov (!%p218_p3), 120   ;;  %vm367_vm2 = vcmask (!%p218_p3), 1043456  }
   0x7   : > { %221 = sbr.rel (%p218_p3) target bundleno = 1486 (0x5ce), region = 36  ;;  %934 = vmatprep.subr.bf16.mxu0 (!%p218_p3), %v1057_v0  ;;  %936 = vmatprep.mubr.msk.bf16.mxu0 (!%p218_p3), %vm1058_vm0, %v1057_v0  ;;  %s1060_s5 = smov (!%p218_p3), 112   ;;  %vm772_vm3 = vcmask (!%p218_p3), 130048   ;;  %vm774_vm4 = vcmask (!%p218_p3), 195584   ;;  %vm777_vm5 = vcmask (!%p218_p3), 257024  }
   0x8   : > { %940 = vmatprep.subr.bf16.mxu1 (!%p218_p3), %v1057_v0  ;;  %942 = vmatprep.mubr.msk.bf16.mxu1 (!%p218_p3), %vm1058_vm0, %v1057_v0  ;;  %s1061_s6 = smov (!%p218_p3), 104   ;;  %s1062_s10 = smov (!%p218_p3), 8  }
   0x9   : > { %s1063_s11 = smov (!%p218_p3), 16   ;;  %s1064_s12 = smov (!%p218_p3), 24  }
   0xe   : > { %s1220_s15 = smov (!%p265_p4, %s1047_s15), 1 }
   0xf   : > { %s1114_s19 = sshll.u32 %s1220_s15, 2  ;;  %s903_s26 = sshll.u32 %s1220_s15, 3 }
  0x10   : > { %s278_s22 = scalar_lea.vmem %s1211_s1, %s1114_s19  ;;  %s271_s25 = scalar_lea.vmem %s1210_s0, %s1114_s19 }
  0x11   : > { %v300_v1 = vld [vmem:[%s278_s22] sm:$0xf]  ;;  %s289_s29 = scalar_lea.vmem %s1213_s3, %s903_s26  ;;  %s285_s9 = scalar_lea.vmem %s1212_s2, %s1114_s19 }
  0x12   : > { %v307_v2 = vsel %vm302_vm1, %v300_v1, 0  ;;  %v299_v3 = vld [vmem:[%s271_s25] sm:$0xf]  ;;  %v908_v13 = vcombine.low %v300_v1, %v300_v1  ;;  %s296_s15 = scalar_lea.vmem %s1214_s4, %s1114_s19 }
  0x13   : > { %935 = vmatpush3.bf16.xpose.msra.mxu0 %v307_v2  ;;  %v1132_v5 = vld [vmem:[%s289_s29] sm:$0xff]  ;;  %v907_v14 = vcombine.low %v299_v3, %v299_v3 }
  0x14   : > { %952 = vmatprep.subr.bf16.mxu0 %v1057_v0  ;;  %419 = vrot.lane.b32.xlu1 %v908_v13, %s1059_s30  ;;  %v1146_v20 = vld [vmem:[%s285_s9] sm:$0xf] }
  0x15   : > { %v369_v21 = vsel %vm367_vm2, %v1146_v20, 0 }
  0x16   : > { %941 = vmatpush3.bf16.msra.mxu1 %v369_v21 }
  0x17   : > { %946 = vmatprep.subr.bf16.mxu1 %v1057_v0 }
  0x18   : > { %414 = vrot.lane.b32.xlu1 %v907_v14, %s1059_s30 }
  0x1a   : > { %937 = vmatmul.mubr.msk.bf16.vlgmr.msra.gmra.mrb[0].mxu0 %vm302_vm1, %v299_v3 }
  0x1b   : > { %954 = vmatprep.mubr.msk.bf16.mxu0 %vm1058_vm0, %v1057_v0 }
  0x1c   : > { %533 = vrot.lane.b32.xlu1 %v907_v14, %s1060_s5 }
  0x20   : > { %648 = vrot.lane.b32.xlu1 %v908_v13, %s1061_s6 }
  0x24   : > { %646 = vrot.lane.b32.xlu1 %v907_v14, %s1061_s6 }
  0x86   : > { %v420_v24 = vpop.permute.xlu1 %419 }
  0x87   : > { %v425_v26 = vsel %vm302_vm1, %v420_v24, 0 }
  0x8a   : > { %v415_v28 = vpop.permute.xlu1 %414 }
  0x8e   : > { %v534_v30 = vpop.permute.xlu1 %533 }
  0x92   : > { %v649_v32 = vpop.permute.xlu1 %648 }
  0x93   : > { %v654_v33 = vsel %vm302_vm1, %v649_v32, 0 }
  0x96   : > { %v647_v34 = vpop.permute.xlu1 %646 }
  0xed   : > { %v343_v4 = vpop.f32.mrb[0].mxu0 }
  0xee   : > { %v349_v6 = vmul.f32 0.35355338, %v343_v4  ;;  %v938_v7 = vpop.f32.mrb[1].mxu0 }
  0xef   : > { %v346_v8 = vpop.f32.mrb[2].mxu0 }
  0xf0   : > { %v939_v9 = vpop.f32.mrb[3].mxu0  ;;  %v350_v10 = vadd.f32 %v349_v6, %v1132_v5 }
  0xf2   : > { %v351_v11 = vmax.f32 %v350_v10, -3.4028235e+38  ;;  %v910_v10 = vcombine.low %v1146_v20, %v1146_v20 }
  0xf4   : > { %v352_v12 = vsel %vm302_vm1, %v351_v11, -inf }
  0xf5   : > { %353 = vmax.xlane.f32.xlu0 %v352_v12 }
 0x182   : > { %v354_v15 = vpop.xlane.xlu0 %353 }
 0x183   : > { %v355_v16 = vsub.f32 %v351_v11, %v354_v15 }
 0x185   : > { %v356_v17 = vmul.f32 1.442695, %v355_v16 }
 0x187   : > { %1017 = vpow2.f32 %v356_v17 }
 0x191   : > { %v1018_v18 = vpop.eup %1017 }
 0x192   : > { %v358_v19 = vsel %vm302_vm1, %v1018_v18, 0.0 }
 0x193   : > { %359 = vadd.xlane.f32.xlu0 %v358_v19 }
 0x1a9   : > { %535 = vrot.lane.b32.xlu0 %v908_v13, %s1060_s5 }
 0x220   : > { %v360_v22 = vpop.xlane.xlu0 %359 }
 0x221   : > { %1019 = vrcp.f32 %v360_v22 }
 0x224   : > { %v536_v29 = vpop.permute.xlu0 %535 }
 0x225   : > { %v541_v31 = vsel %vm302_vm1, %v536_v29, 0 }
 0x22b   : > { %v1020_v23 = vpop.eup %1019 }
 0x22c   : > { %v362_v25 = vmul.f32 %v1020_v23, %v1018_v18 }
 0x22e   : > { %v363_v27 = vpack.c.bf16 %v362_v25, %v362_v25 }
 0x230   : > { %943 = vmatmul.mubr.msk.bf16.vlgmr.msra.gmra.mrb[0].mxu1 %vm302_vm1, %v363_v27 }
 0x231   : > { %947 = vmatpush3.bf16.xpose.msra.mxu1 %v425_v26  ;;  %948 = vmatprep.mubr.msk.bf16.mxu1 %vm1058_vm0, %v1057_v0 }
 0x232   : > { %958 = vmatprep.subr.bf16.mxu1 %v1057_v0 }
 0x238   : > { %949 = vmatmul.mubr.msk.bf16.vlgmr.msra.gmra.mrb[4].mxu1 %vm302_vm1, %v415_v28 }
 0x239   : > { %959 = vmatpush3.bf16.xpose.msra.mxu1 %v541_v31  ;;  %960 = vmatprep.mubr.msk.bf16.mxu1 %vm1058_vm0, %v1057_v0 }
 0x23a   : > { %970 = vmatprep.subr.bf16.mxu1 %v1057_v0 }
 0x240   : > { %961 = vmatmul.mubr.msk.bf16.vlgmr.msra.gmra.mrb[8].mxu1 %vm302_vm1, %v534_v30 }
 0x241   : > { %971 = vmatpush3.bf16.xpose.msra.mxu1 %v654_v33  ;;  %972 = vmatprep.mubr.msk.bf16.mxu1 %vm1058_vm0, %v1057_v0 }
 0x248   : > { %973 = vmatmul.mubr.msk.bf16.vlgmr.msra.gmra.mrb[12].mxu1 %vm302_vm1, %v647_v34 }
 0x303   : > { %v1167_v35 = vpop.f32.mrb[0].mxu1 }
 0x304   : > { %v944_v36 = vpop.f32.mrb[1].mxu1 }
 0x305   : > { %v408_v37 = vpop.f32.mrb[2].mxu1 }
 0x306   : > { %v945_v38 = vpop.f32.mrb[3].mxu1 }
 0x30b   : > { %v461_v39 = vpop.f32.mrb[4].mxu1 }
 0x30c   : > { %v467_v40 = vmul.f32 0.35355338, %v461_v39  ;;  %v950_v41 = vpop.f32.mrb[5].mxu1 }
 0x30d   : > { %v464_v42 = vpop.f32.mrb[6].mxu1 }
 0x30e   : > { %v468_v43 = vadd.f32 %v467_v40, %v1132_v5  ;;  %v951_v44 = vpop.f32.mrb[7].mxu1 }
 0x310   : > { %v469_v45 = vmax.f32 %v468_v43, -3.4028235e+38 }
 0x312   : > { %v470_v46 = vsel %vm302_vm1, %v469_v45, -inf }
 0x313   : > { %471 = vmax.xlane.f32.xlu1 %v470_v46  ;;  %v577_v47 = vpop.f32.mrb[8].mxu1 }
 0x314   : > { %v583_v48 = vmul.f32 0.35355338, %v577_v47  ;;  %v962_v49 = vpop.f32.mrb[9].mxu1 }
 0x315   : > { %v580_v50 = vpop.f32.mrb[10].mxu1 }
 0x316   : > { %v584_v51 = vadd.f32 %v583_v48, %v1132_v5  ;;  %v963_v52 = vpop.f32.mrb[11].mxu1 }
 0x318   : > { %v585_v53 = vmax.f32 %v584_v51, -3.4028235e+38 }
 0x31a   : > { %v586_v54 = vsel %vm302_vm1, %v585_v53, -inf }
 0x31b   : > { %587 = vmax.xlane.f32.xlu0 %v586_v54  ;;  %v690_v55 = vpop.f32.mrb[12].mxu1 }
 0x31c   : > { %v696_v56 = vmul.f32 0.35355338, %v690_v55  ;;  %v974_v57 = vpop.f32.mrb[13].mxu1 }
 0x31d   : > { %v693_v58 = vpop.f32.mrb[14].mxu1 }
 0x31e   : > { %v697_v59 = vadd.f32 %v696_v56, %v1132_v5  ;;  %v975_v60 = vpop.f32.mrb[15].mxu1 }
 0x320   : > { %v698_v61 = vmax.f32 %v697_v59, -3.4028235e+38 }
 0x322   : > { %v699_v62 = vsel %vm302_vm1, %v698_v61, -inf }
 0x323   : > { %700 = vmax.xlane.f32.xlu1 %v699_v62 }
 0x3a0   : > { %v472_v63 = vpop.xlane.xlu1 %471 }
 0x3a1   : > { %v473_v1 = vsub.f32 %v469_v45, %v472_v63 }
 0x3a3   : > { %v474_v2 = vmul.f32 1.442695, %v473_v1 }
 0x3a5   : > { %1021 = vpow2.f32 %v474_v2 }
 0x3a8   : > { %v588_v3 = vpop.xlane.xlu0 %587 }
 0x3a9   : > { %v589_v4 = vsub.f32 %v585_v53, %v588_v3 }
 0x3ab   : > { %v590_v6 = vmul.f32 1.442695, %v589_v4 }
 0x3ad   : > { %1023 = vpow2.f32 %v590_v6 }
 0x3af   : > { %v1022_v7 = vpop.eup %1021 }
 0x3b0   : > { %v476_v8 = vsel %vm302_vm1, %v1022_v7, 0.0  ;;  %v701_v11 = vpop.xlane.xlu1 %700 }
 0x3b1   : > { %477 = vadd.xlane.f32.xlu1 %v476_v8  ;;  %v702_v12 = vsub.f32 %v698_v61, %v701_v11 }
 0x3b3   : > { %v703_v13 = vmul.f32 1.442695, %v702_v12 }
 0x3b5   : > { %1025 = vpow2.f32 %v703_v13 }
 0x3b7   : > { %v1024_v9 = vpop.eup %1023 }
 0x3b8   : > { %v592_v5 = vsel %vm302_vm1, %v1024_v9, 0.0 }
 0x3b9   : > { %593 = vadd.xlane.f32.xlu0 %v592_v5 }
 0x3bf   : > { %v1026_v14 = vpop.eup %1025 }
 0x3c0   : > { %v705_v15 = vsel %vm302_vm1, %v1026_v14, 0.0 }
 0x3c2   : > { %598 = vrot.lane.b32.xlu1 %v910_v10, %s1060_s5 }
 0x3cf   : > { %485 = vrot.lane.b32.xlu0 %v910_v10, %s1059_s30 }
 0x3e6   : > { %706 = vadd.xlane.f32.xlu1 %v705_v15 }
 0x3f7   : > { %711 = vrot.lane.b32.xlu1 %v910_v10, %s1061_s6 }
 0x43e   : > { %v478_v16 = vpop.xlane.xlu1 %477 }
 0x43f   : > { %1027 = vrcp.f32 %v478_v16 }
 0x442   : > { %v599_v22 = vpop.permute.xlu1 %598 }
 0x443   : > { %v604_v24 = vsel %vm367_vm2, %v599_v22, 0 }
 0x446   : > { %v594_v17 = vpop.xlane.xlu0 %593 }
 0x447   : > { %1029 = vrcp.f32 %v594_v17 }
 0x449   : > { %v1028_v18 = vpop.eup %1027 }
 0x44a   : > { %v480_v19 = vmul.f32 %v1028_v18, %v1022_v7  ;;  %v486_v20 = vpop.permute.xlu0 %485 }
 0x44b   : > { %v491_v21 = vsel %vm367_vm2, %v486_v20, 0 }
 0x44c   : > { %953 = vmatpush3.bf16.msra.mxu0 %v491_v21  ;;  %v481_v23 = vpack.c.bf16 %v480_v19, %v480_v19 }
 0x44d   : > { %964 = vmatprep.subr.bf16.mxu0 %v1057_v0 }
 0x44f   : > { %955 = vmatmul.mubr.msk.bf16.vlgmr.msra.gmra.mrb[4].mxu0 %vm302_vm1, %v481_v23 }
 0x450   : > { %965 = vmatpush3.bf16.msra.mxu0 %v604_v24  ;;  %966 = vmatprep.mubr.msk.bf16.mxu0 %vm1058_vm0, %v1057_v0 }
 0x451   : > { %v1030_v25 = vpop.eup %1029  ;;  %976 = vmatprep.subr.bf16.mxu0 %v1057_v0 }
 0x452   : > { %v596_v26 = vmul.f32 %v1030_v25, %v1024_v9 }
 0x454   : > { %v597_v27 = vpack.c.bf16 %v596_v26, %v596_v26 }
 0x457   : > { %967 = vmatmul.mubr.msk.bf16.vlgmr.msra.gmra.mrb[8].mxu0 %vm302_vm1, %v597_v27 }
 0x458   : > { %978 = vmatprep.mubr.msk.bf16.mxu0 %vm1058_vm0, %v1057_v0 }
 0x473   : > { %v707_v28 = vpop.xlane.xlu1 %706 }
 0x474   : > { %1031 = vrcp.f32 %v707_v28 }
 0x477   : > { %v712_v29 = vpop.permute.xlu1 %711 }
 0x478   : > { %v717_v30 = vsel %vm367_vm2, %v712_v29, 0 }
 0x479   : > { %977 = vmatpush3.bf16.msra.mxu0 %v717_v30 }
 0x47e   : > { %v1032_v31 = vpop.eup %1031 }
 0x47f   : > { %v709_v32 = vmul.f32 %v1032_v31, %v1026_v14 }
 0x481   : > { %v710_v33 = vpack.c.bf16 %v709_v32, %v709_v32 }
 0x483   : > { %979 = vmatmul.mubr.msk.bf16.vlgmr.msra.gmra.mrb[12].mxu0 %vm302_vm1, %v710_v33 }
 0x522   : > { %v527_v34 = vpop.f32.mrb[4].mxu0 }
 0x523   : > { %760 = vrot.lane.b32.xlu0 %v527_v34, %s1062_s10  ;;  %v956_v36 = vpop.f32.mrb[5].mxu0 }
 0x524   : > { %v530_v37 = vpop.f32.mrb[6].mxu0 }
 0x525   : > { %v957_v38 = vpop.f32.mrb[7].mxu0 }
 0x52a   : > { %v640_v39 = vpop.f32.mrb[8].mxu0 }
 0x52b   : > { %764 = vrot.lane.b32.xlu1 %v640_v39, %s1063_s11  ;;  %v968_v0 = vpop.f32.mrb[9].mxu0 }
 0x52c   : > { %v643_v40 = vpop.f32.mrb[10].mxu0 }
 0x52d   : > { %v969_v41 = vpop.f32.mrb[11].mxu0 }
 0x556   : > { %v753_v42 = vpop.f32.mrb[12].mxu0 }
 0x557   : > { %768 = vrot.lane.b32.xlu0 %v753_v42, %s1064_s12  ;;  %v980_v43 = vpop.f32.mrb[13].mxu0 }
 0x558   : > { %v756_v44 = vpop.f32.mrb[14].mxu0 }
 0x559   : > { %v981_v45 = vpop.f32.mrb[15].mxu0 }
 0x595   : > { %v761_v46 = vpop.permute.xlu0 %760 }
 0x596   : > { %v771_v48 = vsel %vm302_vm1, %v1167_v35, %v761_v46 }
 0x59d   : > { %v765_v47 = vpop.permute.xlu1 %764 }
 0x59e   : > { %v773_v49 = vsel %vm772_vm3, %v771_v48, %v765_v47 }
 0x5c9   : > { %v769_v50 = vpop.permute.xlu0 %768 }
 0x5ca   : > { %v775_v51 = vsel %vm774_vm4, %v773_v49, %v769_v50 }
 0x5cb   : > { %v776_v52 = vpack.c.bf16 %v775_v51, %v775_v51 }
 0x5cd   : > { %778 = vst.msk [vmem:[%s296_s15] sm:$0xf] %vm777_vm5, %v776_v52 }
 0x5ce PF: > { %s14_s17 = sadd.s32 1, %s1055_s17   ;;  %s1215_s15 = smov %s1051_s16 }
 0x5cf   : > { %p11_p5 = scmp.ge.s32.totalorder %s14_s17, 4   ;;  %s1216_s16 = smov %s1218_s18 }
 0x5d1   :  { %13 = sbr.rel (!%p11_p5) target bundleno = 2 (0x2), region = 75 }

// kernel: _lambda_.44
= control target key start
LH: loop header
LB: loop body
LE: loop exit
PB: predicated region body
PF: predicated region fallthrough
CT: control target
= control target key end

     0   :  { %s546_s12 = smov 0   ;;  %s548_s13 = smov 0   ;;  %s590_s0 = inlined_call_operand.vmem [shape: bf16[16,32], index: 0, kind: input, shape index: {}]   ;;  %s591_s1 = inlined_call_operand.vmem [shape: bf16[32,64], index: 1, kind: input, shape index: {}]   ;;  %s592_s2 = inlined_call_operand.vmem [shape: f32[1,64], index: 2, kind: input, shape index: {}]   ;;  %s593_s3 = inlined_call_operand.vmem [shape: bf16[16,64], index: 3, kind: output, shape index: {}]  }
   0x1   :  { %s550_s14 = smov 0  }
   0x2 LB: > { %s32_s15 = sadd.s32 1, %s518_s13  ;;  %p452_p0 = scmp.ge.s32.totalorder %s522_s14, 1  ;;  %s522_s14 = sphi %s550_s14, %s13_s14   ;;  %s518_s13 = sphi %s548_s13, %s595_s13   ;;  %s514_s12 = sphi %s546_s12, %s594_s12  }
   0x3   : > { %p34_p1 = scmp.ge.s32.totalorder %s32_s15, 2  ;;  %p186_p2 = scmp.lt.s32.totalorder %s522_s14, 3 }
   0x5   : > { %s597_s15 = smov (%p34_p1, %s32_s15), 0  ;;  %p187_p3 = pnand %p452_p0, %p186_p2 }
   0x6   : > { %vm256_vm0 = vcmask (!%p187_p3), 523264   ;;  %v524_v0 = vmov (!%p187_p3), 0.0   ;;  %v498_v1 = vld [vmem:[%s591_s1] sm:$0xff] (!%p187_p3)   ;;  %vm525_vm1 = vmmov (!%p187_p3), 0   ;;  %p225_p4 = scmp.lt.s32.totalorder (!%p187_p3), %s514_s12, 1  ;;  %v499_v2 = vld [vmem:[%s591_s1 + $0x8] sm:$0xff] (!%p187_p3)  }
   0x7   : > { %190 = sbr.rel (%p187_p3) target bundleno = 245 (0xf5), region = 32  ;;  %257 = vst.msk [vmem:[#allocation2] sm:$0xff] (!%p187_p3), %vm256_vm0, %v524_v0  ;;  %464 = vmatprep.subr.bf16.mxu0 (!%p187_p3), %v524_v0  ;;  %468 = vmatprep.mubr.msk.bf16.mxu0 (!%p187_p3), %vm525_vm1, %v524_v0  ;;  %vm276_vm2 = vcmask (!%p187_p3), 261120   ;;  %v458_v10 = vld [vmem:[%s592_s2] ss:$0 sm:$0xff] (!%p187_p3)  ;;  %vm336_vm3 = vcmask (!%p187_p3), 519168  }
   0x8   : > { %465 = vmatpush3.bf16.msra.mxu0 (!%p187_p3), %v498_v1 }
   0x9   : > { %466 = vmatprep.subr.bf16.mxu0 (!%p187_p3), %v524_v0 }
   0xc   : > { %467 = vmatpush3.bf16.msra.mxu0 (!%p187_p3), %v499_v2 }
   0xe   : > { %s599_s12 = smov (!%p225_p4, %s514_s12), 1  ;;  %v258_v4 = vld [vmem:[#allocation2] sm:$0xff] }
   0xf   : > { %s453_s20 = sshll.u32 %s599_s12, 2 }
  0x10   : > { %s231_s23 = scalar_lea.vmem %s590_s0, %s453_s20  ;;  %s250_s28 = scalar_lea.vmem %s593_s3, %s453_s20 }
  0x11   : > { %v259_v3 = vld [vmem:[%s231_s23] sm:$0xf] }
  0x12   : > { %469 = vmatmul.mubr.msk.bf16.vlgmr.msra.gmra.mrb[0].mxu0 %vm276_vm2, %v259_v3 }
  0xe5   : > { %v314_v5 = vpop.f32.mrb[0].mxu0 }
  0xe6   : > { %v320_v6 = vadd.f32 %v314_v5, %v258_v4  ;;  %v470_v7 = vpop.f32.mrb[1].mxu0 }
  0xe7   : > { %v317_v8 = vpop.f32.mrb[2].mxu0 }
  0xe8   : > { %322 = vst.msk [vmem:[#allocation2] sm:$0xff] %vm256_vm0, %v320_v6  ;;  %v471_v9 = vpop.f32.mrb[3].mxu0 }
  0xef   : > { %v326_v11 = vld [vmem:[#allocation2] sm:$0xff] }
  0xf0   : > { %v334_v12 = vadd.f32 %v458_v10, %v326_v11 }
  0xf2   : > { %v335_v13 = vpack.c.bf16 %v334_v12, %v334_v12 }
  0xf4   : > { %337 = vst.msk [vmem:[%s250_s28] sm:$0xf] %vm336_vm3, %v335_v13 }
  0xf5 PF: > { %s13_s14 = sadd.s32 1, %s522_s14   ;;  %s594_s12 = smov %s518_s13 }
  0xf6   : > { %p10_p5 = scmp.ge.s32.totalorder %s13_s14, 4   ;;  %s595_s13 = smov %s597_s15 }
  0xf8   :  { %12 = sbr.rel (!%p10_p5) target bundleno = 2 (0x2), region = 76 }

// kernel: _lambda_.43
= control target key start
LH: loop header
LB: loop body
LE: loop exit
PB: predicated region body
PF: predicated region fallthrough
CT: control target
= control target key end

     0   :  { %s545_s12 = smov 0   ;;  %s547_s13 = smov 0   ;;  %s587_s0 = inlined_call_operand.vmem [shape: bf16[16,32], index: 0, kind: input, shape index: {}]   ;;  %s588_s1 = inlined_call_operand.vmem [shape: bf16[32,32], index: 1, kind: input, shape index: {}]   ;;  %s589_s2 = inlined_call_operand.vmem [shape: f32[1,32], index: 2, kind: input, shape index: {}]   ;;  %s590_s3 = inlined_call_operand.vmem [shape: bf16[16,32], index: 3, kind: output, shape index: {}]  }
   0x1   :  { %s549_s14 = smov 0  }
   0x2 LB: > { %s32_s15 = sadd.s32 1, %s517_s13  ;;  %p451_p0 = scmp.ge.s32.totalorder %s521_s14, 1  ;;  %s521_s14 = sphi %s549_s14, %s13_s14   ;;  %s517_s13 = sphi %s547_s13, %s592_s13   ;;  %s513_s12 = sphi %s545_s12, %s591_s12  }
   0x3   : > { %p34_p1 = scmp.ge.s32.totalorder %s32_s15, 2  ;;  %p186_p2 = scmp.lt.s32.totalorder %s521_s14, 3 }
   0x5   : > { %s594_s15 = smov (%p34_p1, %s32_s15), 0  ;;  %p187_p3 = pnand %p451_p0, %p186_p2 }
   0x6   : > { %v497_v0 = vld [vmem:[%s588_s1] sm:$0xff] (!%p187_p3)   ;;  %v523_v1 = vmov (!%p187_p3), 0.0   ;;  %v498_v2 = vld [vmem:[%s588_s1 + $0x8] sm:$0xff] (!%p187_p3)   ;;  %vm524_vm0 = vmmov (!%p187_p3), 0   ;;  %p225_p4 = scmp.lt.s32.totalorder (!%p187_p3), %s513_s12, 1  ;;  %vm256_vm1 = vcmask (!%p187_p3), 261120  }
   0x7   : > { %190 = sbr.rel (%p187_p3) target bundleno = 245 (0xf5), region = 32  ;;  %463 = vmatprep.subr.bf16.mxu0 (!%p187_p3), %v523_v1  ;;  %467 = vmatprep.mubr.msk.bf16.mxu0 (!%p187_p3), %vm524_vm0, %v523_v1  ;;  %257 = vst.msk [vmem:[#allocation2] sm:$0xff] (!%p187_p3), %vm256_vm1, %v523_v1  ;;  %v457_v10 = vld [vmem:[%s589_s2] ss:$0 sm:$0xff] (!%p187_p3)  ;;  %vm335_vm2 = vcmask (!%p187_p3), 257024  }
   0x8   : > { %464 = vmatpush3.bf16.msra.mxu0 (!%p187_p3), %v497_v0 }
   0x9   : > { %465 = vmatprep.subr.bf16.mxu0 (!%p187_p3), %v523_v1 }
   0xc   : > { %466 = vmatpush3.bf16.msra.mxu0 (!%p187_p3), %v498_v2 }
   0xe   : > { %s596_s12 = smov (!%p225_p4, %s513_s12), 1  ;;  %v258_v4 = vld [vmem:[#allocation2] sm:$0xff] }
   0xf   : > { %s452_s20 = sshll.u32 %s596_s12, 2 }
  0x10   : > { %s231_s23 = scalar_lea.vmem %s587_s0, %s452_s20  ;;  %s250_s28 = scalar_lea.vmem %s590_s3, %s452_s20 }
  0x11   : > { %v259_v3 = vld [vmem:[%s231_s23] sm:$0xf] }
  0x12   : > { %468 = vmatmul.mubr.msk.bf16.vlgmr.msra.gmra.mrb[0].mxu0 %vm256_vm1, %v259_v3 }
  0xe5   : > { %v314_v5 = vpop.f32.mrb[0].mxu0 }
  0xe6   : > { %v320_v6 = vadd.f32 %v314_v5, %v258_v4  ;;  %v469_v7 = vpop.f32.mrb[1].mxu0 }
  0xe7   : > { %v317_v8 = vpop.f32.mrb[2].mxu0 }
  0xe8   : > { %321 = vst.msk [vmem:[#allocation2] sm:$0xff] %vm256_vm1, %v320_v6  ;;  %v470_v9 = vpop.f32.mrb[3].mxu0 }
  0xef   : > { %v325_v11 = vld [vmem:[#allocation2] sm:$0xff] }
  0xf0   : > { %v333_v12 = vadd.f32 %v457_v10, %v325_v11 }
  0xf2   : > { %v334_v13 = vpack.c.bf16 %v333_v12, %v333_v12 }
  0xf4   : > { %336 = vst.msk [vmem:[%s250_s28] sm:$0xf] %vm335_vm2, %v334_v13 }
  0xf5 PF: > { %s13_s14 = sadd.s32 1, %s521_s14   ;;  %s591_s12 = smov %s517_s13 }
  0xf6   : > { %p10_p5 = scmp.ge.s32.totalorder %s13_s14, 4   ;;  %s592_s13 = smov %s594_s15 }
  0xf8   :  { %12 = sbr.rel (!%p10_p5) target bundleno = 2 (0x2), region = 76 }

// kernel: _lambda_.34
= control target key start
LH: loop header
LB: loop body
LE: loop exit
PB: predicated region body
PF: predicated region fallthrough
CT: control target
= control target key end

     0   :  { %s666_s21 = smov 0   ;;  %s668_s22 = smov 0   ;;  %s732_s0 = inlined_call_operand.vmem [shape: bf16[16,64], index: 0, kind: input, shape index: {}]   ;;  %s733_s1 = inlined_call_operand.vmem [shape: bf16[64,32], index: 1, kind: input, shape index: {}]   ;;  %s734_s2 = inlined_call_operand.vmem [shape: f32[1,32], index: 2, kind: input, shape index: {}]   ;;  %s735_s3 = inlined_call_operand.vmem [shape: f32[1,32], index: 3, kind: input, shape index: {}]   ;;  %s736_s4 = inlined_call_operand.vmem [shape: f32[1,32], index: 4, kind: input, shape index: {}]   ;;  %s737_s5 = inlined_call_operand.vmem [shape: bf16[16,32], index: 5, kind: input, shape index: {}]   ;;  %s738_s6 = inlined_call_operand.vmem [shape: bf16[16,32], index: 6, kind: output, shape index: {}]  }
   0x1   :  { %s670_s23 = smov 0  }
   0x2 LB: > { %s28_s24 = sadd.s32 1, %s623_s22  ;;  %p542_p0 = scmp.ge.s32.totalorder %s627_s23, 1  ;;  %s627_s23 = sphi %s670_s23, %s16_s23   ;;  %s623_s22 = sphi %s668_s22, %s740_s22   ;;  %s619_s21 = sphi %s666_s21, %s739_s21  }
   0x3   : > { %p30_p1 = scmp.ge.s32.totalorder %s28_s24, 2  ;;  %p248_p2 = scmp.lt.s32.totalorder %s627_s23, 3 }
   0x5   : > { %s742_s24 = smov (%p30_p1, %s28_s24), 0  ;;  %p249_p3 = pnand %p542_p0, %p248_p2 }
   0x6   : > { %v599_v0 = vld [vmem:[%s733_s1] sm:$0xff] (!%p249_p3)   ;;  %v629_v1 = vmov (!%p249_p3), 0.0   ;;  %v600_v2 = vld [vmem:[%s733_s1 + $0x8] sm:$0xff] (!%p249_p3)   ;;  %vm630_vm0 = vmmov (!%p249_p3), 0   ;;  %p288_p4 = scmp.lt.s32.totalorder (!%p249_p3), %s619_s21, 1  ;;  %vm314_vm1 = vcmask (!%p249_p3), 261120  }
   0x7   : > { %252 = sbr.rel (%p249_p3) target bundleno = 565 (0x235), region = 44  ;;  %561 = vmatprep.subr.bf16.mxu0 (!%p249_p3), %v629_v1  ;;  %569 = vmatprep.mubr.msk.bf16.mxu0 (!%p249_p3), %vm630_vm0, %v629_v1  ;;  %315 = vst.msk [vmem:[#allocation2] sm:$0xff] (!%p249_p3), %vm314_vm1, %v629_v1  ;;  %v601_v3 = vld [vmem:[%s733_s1 + $0x10] sm:$0xff] (!%p249_p3)   ;;  %v602_v4 = vld [vmem:[%s733_s1 + $0x18] sm:$0xff] (!%p249_p3)   ;;  %vm350_vm2 = vcmask (!%p249_p3), 523264   ;;  %vm443_vm3 = vcmask (!%p249_p3), 257024  }
   0x8   : > { %562 = vmatpush3.bf16.msra.mxu0 (!%p249_p3), %v599_v0  ;;  %v551_v13 = vld [vmem:[%s734_s2] ss:$0 sm:$0xff] (!%p249_p3) }
   0x9   : > { %563 = vmatprep.subr.bf16.mxu0 (!%p249_p3), %v629_v1  ;;  %v552_v28 = vld [vmem:[%s735_s3] ss:$0 sm:$0xff] (!%p249_p3) }
   0xa   : > { %v553_v30 = vld [vmem:[%s736_s4] ss:$0 sm:$0xff] (!%p249_p3) }
   0xc   : > { %564 = vmatpush3.bf16.msra.mxu0 (!%p249_p3), %v600_v2 }
   0xd   : > { %565 = vmatprep.subr.bf16.mxu0 (!%p249_p3), %v629_v1 }
   0xe   : > { %s744_s21 = smov (!%p288_p4, %s619_s21), 1  ;;  %v316_v6 = vld [vmem:[#allocation2] sm:$0xff] }
   0xf   : > { %s694_s7 = sshll.u32 %s744_s21, 2 }
  0x10   : > { %566 = vmatpush3.bf16.msra.mxu0 %v601_v3  ;;  %s294_s12 = scalar_lea.vmem %s732_s0, %s694_s7  ;;  %s304_s15 = scalar_lea.vmem %s737_s5, %s694_s7 }
  0x11   : > { %567 = vmatprep.subr.bf16.mxu0 %v629_v1  ;;  %v317_v5 = vld [vmem:[%s294_s12] sm:$0xf]  ;;  %s308_s27 = scalar_lea.vmem %s738_s6, %s694_s7 }
  0x12   : > { %v409_v12 = vld [vmem:[%s304_s15] sm:$0xf] }
  0x13   : > { %v410_v14 = vunpack.c.l.bf16 %v409_v12 }
  0x14   : > { %568 = vmatpush3.bf16.msra.mxu0 %v602_v4 }
  0x17   : > { %570 = vmatmul.mubr.msk.bf16.vlgmr.msra.gmra.mrb[0].mxu0 %vm350_vm2, %v317_v5 }
  0xea   : > { %v388_v7 = vpop.f32.mrb[0].mxu0 }
  0xeb   : > { %v394_v8 = vadd.f32 %v388_v7, %v316_v6  ;;  %v571_v9 = vpop.f32.mrb[1].mxu0 }
  0xec   : > { %v391_v10 = vpop.f32.mrb[2].mxu0 }
  0xed   : > { %396 = vst.msk [vmem:[#allocation2] sm:$0xff] %vm314_vm1, %v394_v8  ;;  %v572_v11 = vpop.f32.mrb[3].mxu0 }
  0xf4   : > { %v400_v15 = vld [vmem:[#allocation2] sm:$0xff] }
  0xf5   : > { %v408_v16 = vadd.f32 %v551_v13, %v400_v15 }
  0xf7   : > { %v411_v17 = vadd.f32 %v410_v14, %v408_v16 }
  0xf9   : > { %v412_v18 = vsel %vm314_vm1, %v411_v17, 0.0 }
  0xfa   : > { %413 = vadd.xlane.f32.xlu0 %v412_v18 }
 0x187   : > { %v414_v19 = vpop.xlane.xlu0 %413 }
 0x188   : > { %v416_v20 = vmul.f32 0.03125, %v414_v19 }
 0x18a   : > { %v417_v21 = vsub.f32 %v411_v17, %v416_v20 }
 0x18c   : > { %v418_v22 = vmul.f32 %v417_v21, %v417_v21 }
 0x18e   : > { %v419_v23 = vsel %vm314_vm1, %v418_v22, 0.0 }
 0x18f   : > { %420 = vadd.xlane.f32.xlu0 %v419_v23 }
 0x21c   : > { %v421_v24 = vpop.xlane.xlu0 %420 }
 0x21d   : > { %v422_v25 = vmul.f32 0.03125, %v421_v24 }
 0x21f   : > { %v423_v26 = vadd.f32 1e-12, %v422_v25 }
 0x221   : > { %603 = vrsqrt.f32 %v423_v26 }
 0x22b   : > { %v604_v27 = vpop.eup %603 }
 0x22c   : > { %v425_v29 = vmul.f32 %v604_v27, %v417_v21 }
 0x22e   : > { %v433_v31 = vmul.f32 %v552_v28, %v425_v29 }
 0x230   : > { %v441_v32 = vadd.f32 %v553_v30, %v433_v31 }
 0x232   : > { %v442_v33 = vpack.c.bf16 %v441_v32, %v441_v32 }
 0x234   : > { %444 = vst.msk [vmem:[%s308_s27] sm:$0xf] %vm443_vm3, %v442_v33 }
 0x235 PF: > { %s16_s23 = sadd.s32 1, %s627_s23   ;;  %s739_s21 = smov %s623_s22 }
 0x236   : > { %p13_p5 = scmp.ge.s32.totalorder %s16_s23, 4   ;;  %s740_s22 = smov %s742_s24 }
 0x238   :  { %15 = sbr.rel (!%p13_p5) target bundleno = 2 (0x2), region = 88 }

// kernel: _lambda_.58
= control target key start
LH: loop header
LB: loop body
LE: loop exit
PB: predicated region body
PF: predicated region fallthrough
CT: control target
= control target key end

     0   :  { %s605_s18 = smov 0   ;;  %s607_s19 = smov 0   ;;  %s665_s0 = inlined_call_operand.vmem [shape: bf16[16,32], index: 0, kind: input, shape index: {}]   ;;  %s666_s1 = inlined_call_operand.vmem [shape: bf16[32,32], index: 1, kind: input, shape index: {}]   ;;  %s667_s2 = inlined_call_operand.vmem [shape: f32[1,32], index: 2, kind: input, shape index: {}]   ;;  %s668_s3 = inlined_call_operand.vmem [shape: f32[1,32], index: 3, kind: input, shape index: {}]   ;;  %s669_s4 = inlined_call_operand.vmem [shape: f32[1,32], index: 4, kind: input, shape index: {}]   ;;  %s670_s5 = inlined_call_operand.vmem [shape: bf16[16,32], index: 5, kind: output, shape index: {}]  }
   0x1   :  { %s609_s20 = smov 0  }
   0x2 LB: > { %s27_s21 = sadd.s32 1, %s567_s19  ;;  %p493_p0 = scmp.ge.s32.totalorder %s571_s20, 1  ;;  %s571_s20 = sphi %s609_s20, %s15_s20   ;;  %s567_s19 = sphi %s607_s19, %s672_s19   ;;  %s563_s18 = sphi %s605_s18, %s671_s18  }
   0x3   : > { %p29_p1 = scmp.ge.s32.totalorder %s27_s21, 2  ;;  %p214_p2 = scmp.lt.s32.totalorder %s571_s20, 3 }
   0x5   : > { %s674_s21 = smov (%p29_p1, %s27_s21), 0  ;;  %p215_p3 = pnand %p493_p0, %p214_p2 }
   0x6   : > { %v541_v0 = vld [vmem:[%s666_s1] sm:$0xff] (!%p215_p3)   ;;  %v573_v1 = vmov (!%p215_p3), 0.0   ;;  %v542_v2 = vld [vmem:[%s666_s1 + $0x8] sm:$0xff] (!%p215_p3)   ;;  %vm574_vm0 = vmmov (!%p215_p3), 0   ;;  %p248_p4 = scmp.lt.s32.totalorder (!%p215_p3), %s563_s18, 1  ;;  %vm270_vm1 = vcmask (!%p215_p3), 261120  }
   0x7   : > { %218 = sbr.rel (%p215_p3) target bundleno = 606 (0x25e), region = 40  ;;  %507 = vmatprep.subr.bf16.mxu0 (!%p215_p3), %v573_v1  ;;  %511 = vmatprep.mubr.msk.bf16.mxu0 (!%p215_p3), %vm574_vm0, %v573_v1  ;;  %271 = vst.msk [vmem:[#allocation2] sm:$0xff] (!%p215_p3), %vm270_vm1, %v573_v1  ;;  %v499_v10 = vld [vmem:[%s667_s2] ss:$0 sm:$0xff] (!%p215_p3)  ;;  %vm406_vm3 = vcmask (!%p215_p3), 257024  }
   0x8   : > { %508 = vmatpush3.bf16.msra.mxu0 (!%p215_p3), %v541_v0  ;;  %v500_v48 = vld [vmem:[%s668_s3] ss:$0 sm:$0xff] (!%p215_p3) }
   0x9   : > { %509 = vmatprep.subr.bf16.mxu0 (!%p215_p3), %v573_v1  ;;  %v501_v50 = vld [vmem:[%s669_s4] ss:$0 sm:$0xff] (!%p215_p3) }
   0xc   : > { %510 = vmatpush3.bf16.msra.mxu0 (!%p215_p3), %v542_v2 }
   0xe   : > { %s676_s18 = smov (!%p248_p4, %s563_s18), 1  ;;  %v272_v4 = vld [vmem:[#allocation2] sm:$0xff] }
   0xf   : > { %s494_s26 = sshll.u32 %s676_s18, 2 }
  0x10   : > { %s254_s29 = scalar_lea.vmem %s665_s0, %s494_s26  ;;  %s264_s13 = scalar_lea.vmem %s670_s5, %s494_s26 }
  0x11   : > { %v273_v3 = vld [vmem:[%s254_s29] sm:$0xf] }
  0x12   : > { %512 = vmatmul.mubr.msk.bf16.vlgmr.msra.gmra.mrb[0].mxu0 %vm270_vm1, %v273_v3 }
  0xe5   : > { %v328_v5 = vpop.f32.mrb[0].mxu0 }
  0xe6   : > { %v334_v6 = vadd.f32 %v328_v5, %v272_v4  ;;  %v513_v7 = vpop.f32.mrb[1].mxu0 }
  0xe7   : > { %v331_v8 = vpop.f32.mrb[2].mxu0 }
  0xe8   : > { %335 = vst.msk [vmem:[#allocation2] sm:$0xff] %vm270_vm1, %v334_v6  ;;  %v514_v9 = vpop.f32.mrb[3].mxu0 }
  0xef   : > { %v339_v11 = vld [vmem:[#allocation2] sm:$0xff] }
  0xf0   : > { %v347_v12 = vadd.f32 %v499_v10, %v339_v11 }
  0xf2   : > { %v349_v13 = vmul.f32 0.70710677, %v347_v12  ;;  %v348_v35 = vmul.f32 0.5, %v347_v12 }
  0xf4   : > { %v350_v14 = vand.u32 2147483647, %v349_v13  ;;  %vm370_vm2 = vcmp.ge.f32.partialorder %v349_v13, 0.0 }
  0xf6   : > { %v351_v15 = vmul.f32 0.3275911, %v350_v14  ;;  %v364_v17 = vsub.f32 0.0, %v350_v14 }
  0xf8   : > { %v352_v16 = vadd.f32 1.0, %v351_v15  ;;  %v365_v19 = vmul.f32 %v364_v17, %v350_v14 }
  0xfa   : > { %543 = vrcp.f32 %v352_v16  ;;  %v366_v22 = vmul.f32 1.442695, %v365_v19 }
  0xfc   : > { %545 = vpow2.f32 %v366_v22 }
 0x104   : > { %v544_v18 = vpop.eup %543 }
 0x105   : > { %v355_v20 = vmul.f32 1.0614054, %v544_v18 }
 0x106   : > { %v546_v30 = vpop.eup %545 }
 0x107   : > { %v356_v21 = vadd.f32 -1.4531521, %v355_v20 }
 0x109   : > { %v357_v23 = vmul.f32 %v544_v18, %v356_v21 }
 0x10b   : > { %v358_v24 = vadd.f32 1.4214138, %v357_v23 }
 0x10d   : > { %v359_v25 = vmul.f32 %v544_v18, %v358_v24 }
 0x10f   : > { %v360_v26 = vadd.f32 -0.28449672, %v359_v25 }
 0x111   : > { %v361_v27 = vmul.f32 %v544_v18, %v360_v26 }
 0x113   : > { %v362_v28 = vadd.f32 0.2548296, %v361_v27 }
 0x115   : > { %v363_v29 = vmul.f32 %v544_v18, %v362_v28 }
 0x117   : > { %v368_v31 = vmul.f32 %v546_v30, %v363_v29 }
 0x119   : > { %v369_v32 = vsub.f32 1.0, %v368_v31 }
 0x11b   : > { %v371_v33 = vsub.f32 0.0, %v369_v32 }
 0x11d   : > { %v372_v34 = vsel %vm370_vm2, %v369_v32, %v371_v33 }
 0x11e   : > { %v373_v36 = vadd.f32 1.0, %v372_v34 }
 0x120   : > { %v374_v37 = vmul.f32 %v373_v36, %v348_v35 }
 0x122   : > { %v375_v38 = vsel %vm270_vm1, %v374_v37, 0.0 }
 0x123   : > { %376 = vadd.xlane.f32.xlu0 %v375_v38 }
 0x1b0   : > { %v377_v39 = vpop.xlane.xlu0 %376 }
 0x1b1   : > { %v379_v40 = vmul.f32 0.03125, %v377_v39 }
 0x1b3   : > { %v380_v41 = vsub.f32 %v374_v37, %v379_v40 }
 0x1b5   : > { %v381_v42 = vmul.f32 %v380_v41, %v380_v41 }
 0x1b7   : > { %v382_v43 = vsel %vm270_vm1, %v381_v42, 0.0 }
 0x1b8   : > { %383 = vadd.xlane.f32.xlu0 %v382_v43 }
 0x245   : > { %v384_v44 = vpop.xlane.xlu0 %383 }
 0x246   : > { %v385_v45 = vmul.f32 0.03125, %v384_v44 }
 0x248   : > { %v386_v46 = vadd.f32 1e-06, %v385_v45 }
 0x24a   : > { %547 = vrsqrt.f32 %v386_v46 }
 0x254   : > { %v548_v47 = vpop.eup %547 }
 0x255   : > { %v388_v49 = vmul.f32 %v548_v47, %v380_v41 }
 0x257   : > { %v396_v51 = vmul.f32 %v500_v48, %v388_v49 }
 0x259   : > { %v404_v52 = vadd.f32 %v501_v50, %v396_v51 }
 0x25b   : > { %v405_v53 = vpack.c.bf16 %v404_v52, %v404_v52 }
 0x25d   : > { %407 = vst.msk [vmem:[%s264_s13] sm:$0xf] %vm406_vm3, %v405_v53 }
 0x25e PF: > { %s15_s20 = sadd.s32 1, %s571_s20   ;;  %s671_s18 = smov %s567_s19 }
 0x25f   : > { %p12_p5 = scmp.ge.s32.totalorder %s15_s20, 4   ;;  %s672_s19 = smov %s674_s21 }
 0x261   :  { %14 = sbr.rel (!%p12_p5) target bundleno = 2 (0x2), region = 81 }

// kernel: _lambda_.59
= control target key start
LH: loop header
LB: loop body
LE: loop exit
PB: predicated region body
PF: predicated region fallthrough
CT: control target
= control target key end

     0   :  { %8 = vsyncpa [#allocation4], 0  ;;  %s763_s0 = inlined_call_operand.vmem [shape: bf16[16,32], index: 0, kind: input, shape index: {}]   ;;  %s764_s1 = inlined_call_operand.vmem [shape: bf16[32,64], index: 1, kind: input, shape index: {}]   ;;  %s765_s2 = inlined_call_operand.vmem [shape: f32[1,64], index: 2, kind: input, shape index: {}]   ;;  %s766_s3 = inlined_call_operand.hbm [shape: f32[16,64], index: 3, kind: output, shape index: {}]  }
   0x1   :  { %10 = vsyncpa [#allocation4 + $0x1], 0  ;;  %s639_s12 = smov 0   ;;  %s641_s13 = smov 0  }
   0x2   :  { %s643_s14 = smov 0   ;;  %s645_s15 = smov 0  }
   0x3   :  { %s647_s16 = smov 0   ;;  %s649_s17 = smov 0  }
   0x4 LB: > { %s449_s18 = sadd.s32 4294967295, %s614_s17   ;;  %s450_s19 = sadd.s32 4294967294, %s614_s17   ;;  %s614_s17 = sphi %s649_s17, %s16_s17   ;;  %s610_s16 = sphi %s647_s16, %s773_s16   ;;  %s606_s15 = sphi %s645_s15, %s772_s15   ;;  %s602_s14 = sphi %s643_s14, %s771_s14   ;;  %s598_s13 = sphi %s641_s13, %s770_s13   ;;  %s594_s12 = sphi %s639_s12, %s769_s12  }
   0x5   : > { %s35_s20 = sadd.s32 1, %s610_s16  ;;  %s126_s21 = sadd.s32 1, %s602_s14 }
   0x6   : > { %p37_p0 = scmp.ge.s32.totalorder %s35_s20, 2  ;;  %p136_p1 = scmp.ne.s32.totalorder %s602_s14, %s598_s13 }
   0x7   : > { %p137_p2 = scmp.eq.s32.totalorder %s449_s18, 1  ;;  %p142_p3 = scmp.ne.s32.totalorder %s598_s13, %s594_s12 }
   0x8   : > { %s775_s20 = smov (%p37_p0, %s35_s20), 0  ;;  %p143_p5 = scmp.eq.s32.totalorder %s450_s19, 1 }
   0x9   : > { %p679_p4 = por %p137_p2, %p136_p1  ;;  %s121_s23 = ssub.s32 %s610_s16, %s775_s20 }
   0xa   : > { %p455_p6 = scmp.ge.s32.totalorder %s614_s17, 1  ;;  %p124_p7 = scmp.eq.s32.totalorder %s121_s23, 0 }
   0xb   : > { %p686_p8 = por %p143_p5, %p142_p3  ;;  %p189_p9 = scmp.lt.s32.totalorder %s614_s17, 3 }
   0xc   : > { %s692_s25 = scalar_select %p124_p7, %s602_s14, %s126_s21  }
   0xd   : > { %p190_p10 = pnand %p455_p6, %p189_p9 }
   0xe   : > { %v534_v0 = vld [vmem:[%s764_s1] sm:$0xff] (!%p190_p10)   ;;  %v616_v1 = vmov (!%p190_p10), 0.0   ;;  %v535_v2 = vld [vmem:[%s764_s1 + $0x8] sm:$0xff] (!%p190_p10)   ;;  %vm617_vm0 = vmmov (!%p190_p10), 0   ;;  %p226_p11 = scmp.lt.s32.totalorder (!%p190_p10), %s606_s15, 1  ;;  %vm250_vm1 = vcmask (!%p190_p10), 523264  }
   0xf   : > { %193 = sbr.rel (%p190_p10) target bundleno = 265 (0x109), region = 32  ;;  %469 = vmatprep.subr.bf16.mxu0 (!%p190_p10), %v616_v1  ;;  %473 = vmatprep.mubr.msk.bf16.mxu0 (!%p190_p10), %vm617_vm0, %v616_v1  ;;  %251 = vst.msk [vmem:[#allocation2] sm:$0xff] (!%p190_p10), %vm250_vm1, %v616_v1  ;;  %vm270_vm2 = vcmask (!%p190_p10), 261120   ;;  %s223_s8 = sand.u32 (!%p190_p10), 1, %s598_s13   ;;  %v461_v10 = vld [vmem:[%s765_s2] ss:$0 sm:$0xff] (!%p190_p10) }
  0x10   : > { %470 = vmatpush3.bf16.msra.mxu0 (!%p190_p10), %v534_v0  ;;  %s456_s9 = sshll.u32 (!%p190_p10), %s223_s8, 3  ;;  %s463_s18 = sshll.u32 (!%p190_p10), %s606_s15, 7 }
  0x11   : > { %471 = vmatprep.subr.bf16.mxu0 (!%p190_p10), %v616_v1  ;;  %s225_s19 = scalar_lea.vmem (!%p190_p10), [#allocation3], %s456_s9  ;;  %s715_s27 = scalar_lea.hbm (!%p190_p10), %s766_s3, %s463_s18 }
  0x12   : > { %s345_s21 = sshll.u32 (!%p190_p10), %s225_s19, 4  ;;  %s331_s28 = scalar_lea.sflag (!%p190_p10), [#allocation4], %s223_s8  ;;  %s717_s21 = int_to_ptr.vmem [resolvable:$true] %s345_s21 }
  0x13   : > { %s536_s29 = scalar_lea.vmem (!%p190_p10), %s717_s21, 128 }
  0x14   : > { %472 = vmatpush3.bf16.msra.mxu0 (!%p190_p10), %v535_v2  ;;  %p537_p12 = scmp.ne.s32.totalorder (!%p190_p10), %s717_s21, %s536_s29 }
  0x16   : > { %s227_s30 = scalar_select %p226_p11, %s606_s15, 1  ;;  %v252_v4 = vld [vmem:[#allocation2] sm:$0xff] }
  0x17   : > { %p538_p13 = pnand %p537_p12, %p679_p4  ;;  %s618_s15 = smov [#allocation3]  }
  0x18   : > { %s457_s4 = sshll.u32 %s227_s30, 2  ;;  %s540_s30 = sshll.u32 %s618_s15, 4  ;;  %s541_s30 = int_to_ptr.vmem [resolvable:$false] %s540_s30 }
  0x19   : > { %s232_s7 = scalar_lea.vmem %s763_s0, %s457_s4  ;;  %p539_p0 = pneg %p538_p13 }
  0x1a   : > { %v253_v3 = vld [vmem:[%s232_s7] sm:$0xf]  ;;  %s542_s4 = scalar_lea.vmem %s541_s30, 256  ;;  %p543_p1 = scmp.lt.s32.totalorder %s717_s21, %s541_s30 }
  0x1b   : > { %474 = vmatmul.mubr.msk.bf16.vlgmr.msra.gmra.mrb[0].mxu0 %vm270_vm2, %v253_v3  ;;  %p544_p2 = scmp.lt.s32.totalorder %s542_s4, %s536_s29 }
  0x1d   : > { %p545_p3 = por %p544_p2, %p543_p1 }
  0x1f   : > { %p546_p5 = pnand %p545_p3, %p539_p0 }
  0xee   : > { %v308_v5 = vpop.f32.mrb[0].mxu0 }
  0xef   : > { %v314_v6 = vadd.f32 %v308_v5, %v252_v4  ;;  %v475_v7 = vpop.f32.mrb[1].mxu0 }
  0xf0   : > { %v311_v8 = vpop.f32.mrb[2].mxu0 }
  0xf1   : > { %316 = vst.msk [vmem:[#allocation2] sm:$0xff] %vm250_vm1, %v314_v6  ;;  %v476_v9 = vpop.f32.mrb[3].mxu0 }
  0xf8   : > { %v320_v11 = vld [vmem:[#allocation2] sm:$0xff] }
  0xf9   : > { %v328_v12 = vadd.f32 %v461_v10, %v320_v11 }
  0xfb   : > { %329 = vst.msk [vmem:[%s225_s19] sm:$0xff] %vm250_vm1, %v328_v12 }
  0xfc   : > { %549 = shalt.err (!%p546_p5)
}
  0xfd   : > { %s550_s5 = scalar_lea.hbm %s715_s27, 128  ;;  %s554_s8 = scalar_lea.hbm %s766_s3, 256 }
  0xfe   : > { %p551_p6 = scmp.ne.s32.totalorder %s715_s27, %s550_s5  ;;  %p555_p10 = scmp.lt.u32.totalorder %s715_s27, %s766_s3 }
  0xff   : > { %p556_p11 = scmp.lt.u32.totalorder %s554_s8, %s550_s5  ;;  %p558_p13 = scmp.lt.u32.totalorder %s550_s5, %s715_s27 }
 0x100   : > { %p552_p7 = pnand %p551_p6, %p679_p4 }
 0x101   : > { %p557_p12 = por %p556_p11, %p555_p10 }
 0x102   : > { %p553_p9 = pneg %p552_p7 }
 0x103   : > { %p559_p0 = por %p558_p13, %p557_p12 }
 0x105   : > { %p560_p1 = pnand %p559_p0, %p553_p9 }
 0x107   : > { %563 = shalt.err (!%p560_p1)
}
 0x108   : > { %477 = dma.vmem_to_hbm [thread:$0]  (%p679_p4), %s717_s21, 128, %s715_s27, %s331_s28  }
 0x109 PF: > { %p483_p2 = scmp.ge.s32.totalorder %s614_s17, 2  ;;  %s357_s11 = sand.u32 1, %s594_s12  }
 0x10a   : > { %s358_s18 = scalar_lea.sflag [#allocation4], %s357_s11 }
 0x10b   : > { %p480_p3 = pnand %p483_p2, %p686_p8 }
 0x10d   : > { %589 = dma.done.wait (!%p480_p3), %s358_s18, 128  }
 0x10e   : > { %591 = vsyncadd (!%p480_p3), %s358_s18, 4294967168  ;;  %s16_s17 = sadd.s32 1, %s614_s17   ;;  %s769_s12 = smov %s598_s13 }
 0x10f   : > { %p13_p5 = scmp.ge.s32.totalorder %s16_s17, 4   ;;  %s770_s13 = smov %s602_s14 }
 0x110   : > { %s771_s14 = smov %s692_s25  ;;  %s772_s15 = smov %s610_s16 }
 0x111   : > { %s773_s16 = smov %s775_s20  ;;  %15 = sbr.rel (!%p13_p5) target bundleno = 4 (0x4), region = 81 }
 0x118   :  { %363 = vsyncpa [#allocation4], 1 }
 0x119   :  { %365 = vsyncpa [#allocation4 + $0x1], 1 }

</bundles_post_ra>
